<compile_context>
chip_gen: v6e
topology: v6e:2x2x1
jax: 0.10.0
libtpu: 0.0.40
codegen_flags: <defaults>
</compile_context>

<pallas_src>
import jax
import jax.numpy as jnp
import numpy as np
from jax.experimental import pallas as pl
from jax.experimental.pallas import tpu as pltpu

# ----- model hyper-parameters (small, consistent with the module) -----
N = 32            # num_nodes per graph
NUM_FEATURES = 16
HIDDEN = 32
NUM_CLASSES = 8
NLAYER = 2
K = 3
ALPHA = 0.1
NUM_EDGES = 64

# ----- batched kernel layout (perf review: fill the MXU / lane-dense IO) -----
GB = 8                        # graphs per kernel call -> 256 node rows
BN = GB * N                   # 256 (MXU edge on v6e/v7x)
C_PAD = 128                   # class dim padded to one full lane tile
NEG_BIG = -1e30               # padded-class bias: exp() underflows to exactly 0

# Static row offsets inside the packed bf16 matrix buffer (lane width = BN).
_LAYER_IN_DIMS = [NUM_FEATURES] + [HIDDEN] * NLAYER   # input dim of each Linear
_W_ROWS = []
_r = NLAYER * BN
for _d_in in _LAYER_IN_DIMS:
    _W_ROWS.append(_r)
    _r += _d_in
_MATS_ROWS = ((_r + 15) // 16) * 16                    # bf16 sublane-tile aligned

# Static row offsets inside the packed f32 vector buffer (lane width = C_PAD).
#   rows 0..NLAYER-1 : biases of Linear_1..Linear_{nlayer-1} and Linear_last
#   rows _B0F_ROW..  : layer-0 bias folded through P0  ((P0 @ 1) b0^T, BN x H)
_B0F_ROW = ((NLAYER + 7) // 8) * 8
_VECS_ROWS = _B0F_ROW + BN


# ----------------------- fused forward kernel -------------------------
def _fused_gcn_kernel(x_ref, mats_ref, vecs_ref, o_ref):
    bf16, f32 = jnp.bfloat16, jnp.float32

    x = x_ref[...].astype(bf16)                                    # (BN, F)

    # ---- layer 0 (reordered; exact):  (P0 @ x) W0 + (P0 @ 1) b0^T ----
    p0 = mats_ref[0:BN, :]                                         # (BN, BN) bf16
    w0t = mats_ref[_W_ROWS[0]:_W_ROWS[0] + NUM_FEATURES, 0:HIDDEN]  # (F, H)  bf16
    b0f = vecs_ref[_B0F_ROW:_B0F_ROW + BN, 0:HIDDEN]               # (BN, H) f32
    px = jnp.dot(p0, x, preferred_element_type=f32)                # (BN, F)
    h = jnp.dot(px.astype(bf16), w0t, preferred_element_type=f32) + b0f
    h = jnp.maximum(h, 0.0)

    # ---- layers 1..nlayer-1: Linear -> K-hop propagation (one P matmul) -> ReLU
    for i in range(1, NLAYER):
        w = mats_ref[_W_ROWS[i]:_W_ROWS[i] + HIDDEN, 0:HIDDEN]     # (H, H) bf16
        b = vecs_ref[i - 1:i, 0:HIDDEN]                            # (1, H) f32
        p = mats_ref[i * BN:(i + 1) * BN, :]                       # (BN, BN) bf16
        h = jnp.dot(h.astype(bf16), w, preferred_element_type=f32) + b
        h = jnp.dot(p, h.astype(bf16), preferred_element_type=f32)
        h = jnp.maximum(h, 0.0)

    # ---- final Linear, classes padded to 128 lanes (lane-dense store) ----
    w = mats_ref[_W_ROWS[NLAYER]:_W_ROWS[NLAYER] + HIDDEN, 0:C_PAD]  # (H, 128) bf16
    b = vecs_ref[NLAYER - 1:NLAYER, 0:C_PAD]                         # (1, 128) f32
    logits = jnp.dot(h.astype(bf16), w, preferred_element_type=f32) + b

    # row-wise log_softmax; padded lanes hold -1e30 so max/sum are unaffected
    m = jnp.max(logits, axis=-1, keepdims=True)
    s = logits - m
    o_ref[...] = s - jnp.log(jnp.sum(jnp.exp(s), axis=-1, keepdims=True))


@jax.jit
def gcn_rw_mini_g_forward(x, mats, vecs):
    """Single fused, grid-less pallas_call: 3 input DMAs, 1 lane-dense output."""
    vmem = pl.BlockSpec(memory_space=pltpu.MemorySpace.VMEM)
    out_pad = pl.pallas_call(
        _fused_gcn_kernel,
        in_specs=[vmem, vmem, vmem],
        out_specs=vmem,
        out_shape=jax.ShapeDtypeStruct((BN, C_PAD), jnp.float32),
        compiler_params=pltpu.CompilerParams(
            vmem_limit_bytes=16 * 1024 * 1024),      # explicit budget (v7x-safe)
    )(x, mats, vecs)
    return out_pad[:, :NUM_CLASSES]                  # wrapper-side layout plumbing


# ------------- one-time packing of eval-mode constants ---------------
def pack_params(prop_bd, weights, biases):
    """Pack P_i (block-diag over graphs), all weights and biases into two
    tile-aligned buffers: one bf16 matrix slab, one f32 vector slab."""
    mats = np.zeros((_MATS_ROWS, BN), np.float32)
    for i in range(NLAYER):
        mats[i * BN:(i + 1) * BN, :] = np.asarray(prop_bd[i], np.float32)
    for li, w in enumerate(weights):
        wt = np.asarray(w, np.float32).T                     # (d_in, d_out)
        d_in, d_out = wt.shape
        mats[_W_ROWS[li]:_W_ROWS[li] + d_in, :d_out] = wt    # padded cols stay 0

    vecs = np.zeros((_VECS_ROWS, C_PAD), np.float32)
    for i in range(1, NLAYER):                               # hidden-layer biases
        vecs[i - 1, :HIDDEN] = np.asarray(biases[i], np.float32)
    vecs[NLAYER - 1, :] = NEG_BIG                            # final bias, padded
    vecs[NLAYER - 1, :NUM_CLASSES] = np.asarray(biases[-1], np.float32)
    rowsum = np.asarray(prop_bd[0]).sum(axis=1, keepdims=True)      # (BN, 1)
    vecs[_B0F_ROW:_B0F_ROW + BN, :HIDDEN] = (
        rowsum * np.asarray(biases[0])[None, :]).astype(np.float32)  # folded b0

    return jnp.asarray(mats, dtype=jnp.bfloat16), jnp.asarray(vecs)


# ------------------------- references ---------------------------------
def ref_fused_mixed(x, mats, vecs):
    """Pure-JAX computation structurally identical to the Pallas kernel,
    consuming the SAME packed bf16/f32 operands (tight-tolerance check)."""
    bf16, f32 = jnp.bfloat16, jnp.float32
    xb = x.astype(bf16)
    p0 = mats[0:BN, :]
    w0t = mats[_W_ROWS[0]:_W_ROWS[0] + NUM_FEATURES, :HIDDEN]
    b0f = vecs[_B0F_ROW:_B0F_ROW + BN, :HIDDEN]
    px = jnp.dot(p0, xb, preferred_element_type=f32)
    h = jnp.dot(px.astype(bf16), w0t, preferred_element_type=f32) + b0f
    h = jnp.maximum(h, 0.0)
    for i in range(1, NLAYER):
        w = mats[_W_ROWS[i]:_W_ROWS[i] + HIDDEN, :HIDDEN]
        b = vecs[i - 1:i, :HIDDEN]
        p = mats[i * BN:(i + 1) * BN, :]
        h = jnp.dot(h.astype(bf16), w, preferred_element_type=f32) + b
        h = jnp.dot(p, h.astype(bf16), preferred_element_type=f32)
        h = jnp.maximum(h, 0.0)
    w = mats[_W_ROWS[NLAYER]:_W_ROWS[NLAYER] + HIDDEN, :C_PAD]
    b = vecs[NLAYER - 1:NLAYER, :C_PAD]
    logits = jnp.dot(h.astype(bf16), w, preferred_element_type=f32) + b
    m = jnp.max(logits, axis=-1, keepdims=True)
    s = logits - m
    return (s - jnp.log(jnp.sum(jnp.exp(s), axis=-1, keepdims=True)))[:, :NUM_CLASSES]


def ref_fused_np(x, prop_bd, weights, biases):
    """Float64 version of the kernel's restructuring (P collapse, layer-0
    reorder + bias fold, class padding) - used to prove the rewrite is exact."""
    rowsum = prop_bd[0].sum(axis=1, keepdims=True)
    h = (prop_bd[0] @ x) @ weights[0].T + rowsum * biases[0][None, :]
    h = np.maximum(h, 0.0)
    for i in range(1, NLAYER):
        h = prop_bd[i] @ (h @ weights[i].T + biases[i])
        h = np.maximum(h, 0.0)
    w2 = np.zeros((C_PAD, HIDDEN)); w2[:NUM_CLASSES] = weights[-1]
    b2 = np.full((C_PAD,), NEG_BIG); b2[:NUM_CLASSES] = biases[-1]
    logits = h @ w2.T + b2
    m = logits.max(axis=1, keepdims=True)
    s = logits - m
    return (s - np.log(np.exp(s).sum(axis=1, keepdims=True)))[:, :NUM_CLASSES]


def ref_chain_per_graph(x_g, adjn_g, weights, biases, att):
    """Faithful eval-mode module forward for ONE graph (float64, K-hop chain)."""
    h = x_g
    for i in range(NLAYER):
        h = h @ weights[i].T + biases[i]
        cur = h
        acc = h * att[i, 0]
        for k in range(1, K + 1):
            cur = adjn_g @ cur
            acc = acc + cur * att[i, k]
        h = np.maximum(acc, 0.0)
    h = h @ weights[-1].T + biases[-1]
    m = h.max(axis=1, keepdims=True)
    s = h - m
    return s - np.log(np.exp(s).sum(axis=1, keepdims=True))


if __name__ == "__main__":
    key = jax.random.PRNGKey(0)
    k_graph, k_x, k_w = jax.random.split(key, 3)

    # --- att parameter: alpha*(1-alpha)^k, last entry (1-alpha)^K, tiled ---
    att = ALPHA * (1.0 - ALPHA) ** np.arange(K + 1, dtype=np.float64)
    att[-1] = (1.0 - ALPHA) ** K
    att = np.tile(att[None, :], (NLAYER, 1))

    # --- GB independent synthetic graphs; per-layer propagation polynomial
    #     P_i = sum_k att[i,k] A_hat^k, assembled block-diagonally over graphs ---
    prop_bd64 = np.zeros((NLAYER, BN, BN), np.float64)
    adjns = []
    for g in range(GB):
        ks, kd = jax.random.split(jax.random.fold_in(k_graph, g))
        src = np.asarray(jax.random.randint(ks, (NUM_EDGES,), 0, N))
        dst = np.asarray(jax.random.randint(kd, (NUM_EDGES,), 0, N))
        A = np.zeros((N, N), np.float64)
        A[src, dst] = 1.0
        A = np.maximum(A, A.T)                       # to_undirected
        np.fill_diagonal(A, 1.0)                     # add_remaining_self_loops
        deg = A.sum(axis=0)                          # sparsesum(adj, dim=0)
        dinv = deg ** -0.5
        adjn = dinv[:, None] * A * dinv[None, :]     # D^-1/2 A D^-1/2
        adjns.append(adjn)
        powers = [np.eye(N)]
        for _ in range(K):
            powers.append(adjn @ powers[-1])
        P_g = np.einsum("lk,kij->lij", att, np.stack(powers))   # (NLAYER, N, N)
        prop_bd64[:, g * N:(g + 1) * N, g * N:(g + 1) * N] = P_g

    # --- node features of all GB graphs, stacked along rows ---
    x = jax.random.normal(k_x, (BN, NUM_FEATURES), jnp.float32)

    # --- shared Linear parameters: [F->H], (nlayer-1)x[H->H], [H->C] ---
    layer_dims = ([(NUM_FEATURES, HIDDEN)] + [(HIDDEN, HIDDEN)] * (NLAYER - 1)
                  + [(HIDDEN, NUM_CLASSES)])
    weights, biases = [], []
    for li, (d_in, d_out) in enumerate(layer_dims):
        kw = jax.random.fold_in(k_w, 2 * li)
        kb = jax.random.fold_in(k_w, 2 * li + 1)
        weights.append(np.asarray(jax.random.normal(kw, (d_out, d_in), jnp.float32))
                       / np.sqrt(d_in))
        biases.append(np.asarray(jax.random.normal(kb, (d_out,), jnp.float32)) * 0.01)

    # --- one-time packing of all eval-mode constants into two buffers ---
    mats, vecs = pack_params(prop_bd64, weights, biases)

    # --- run the fused Pallas kernel ---
    out = gcn_rw_mini_g_forward(x, mats, vecs)
    out = jax.block_until_ready(out)
    assert out.shape == (BN, NUM_CLASSES)

    # (1) Kernel vs structurally identical mixed-precision JAX computation
    #     (same packed bf16/f32 operands).
    ref_mixed = jax.block_until_ready(ref_fused_mixed(x, mats, vecs))
    np.testing.assert_allclose(np.asarray(out), np.asarray(ref_mixed),
                               rtol=5e-3, atol=5e-3)

    # (2) The P-polynomial collapse, layer-0 reorder + bias fold and class
    #     padding are exact rewrites of the module's K-hop chain (float64).
    x64 = np.asarray(x, np.float64)
    w64 = [w.astype(np.float64) for w in weights]
    b64 = [b.astype(np.float64) for b in biases]
    fused64 = ref_fused_np(x64, prop_bd64, w64, b64)
    chain64 = np.concatenate(
        [ref_chain_per_graph(x64[g * N:(g + 1) * N], adjns[g], w64, b64, att)
         for g in range(GB)], axis=0)
    np.testing.assert_allclose(fused64, chain64, rtol=1e-9, atol=1e-9)

    # (3) End-to-end sanity: bf16 kernel vs exact float64 module chain.
    np.testing.assert_allclose(np.asarray(out), chain64, rtol=1e-1, atol=1e-1)

    print("KERNEL_OK")
</pallas_src>

<mosaic_0001>
module attributes {stable_mosaic.version = 11 : i64} {
  func.func @_fused_gcn_kernel(%arg0: memref<256x16xf32, #tpu.memory_space<vmem>>, %arg1: memref<592x256xbf16, #tpu.memory_space<vmem>>, %arg2: memref<264x128xf32, #tpu.memory_space<vmem>>, %arg3: memref<256x128xf32, #tpu.memory_space<vmem>>) attributes {dimension_semantics = [], scalar_prefetch = 0 : i64, scratch_operands = 0 : i64, tpu.core_type = #tpu.core_type<tc>} {
    %c0 = arith.constant 0 : index
    %c0_0 = arith.constant 0 : index
    %0 = vector.load %arg0[%c0, %c0_0] : memref<256x16xf32, #tpu.memory_space<vmem>>, vector<256x16xf32>
    %1 = arith.truncf %0 : vector<256x16xf32> to vector<256x16xbf16>
    %c0_1 = arith.constant 0 : index
    %c0_2 = arith.constant 0 : index
    %2 = vector.load %arg1[%c0_1, %c0_2] : memref<592x256xbf16, #tpu.memory_space<vmem>>, vector<256x256xbf16>
    %c512 = arith.constant 512 : index
    %c0_3 = arith.constant 0 : index
    %3 = vector.load %arg1[%c512, %c0_3] : memref<592x256xbf16, #tpu.memory_space<vmem>>, vector<16x32xbf16>
    %c8 = arith.constant 8 : index
    %c0_4 = arith.constant 0 : index
    %4 = vector.load %arg2[%c8, %c0_4] : memref<264x128xf32, #tpu.memory_space<vmem>>, vector<256x32xf32>
    %cst = arith.constant dense<0.000000e+00> : vector<256x16xf32>
    %5 = tpu.matmul %2, %1, %cst {dimension_numbers = #tpu.dot_dimension_numbers<[1], [0], [0], [1], [0, 0, 1, 1], [], []>} : vector<256x256xbf16>, vector<256x16xbf16>, vector<256x16xf32> -> vector<256x16xf32>
    %6 = arith.truncf %5 : vector<256x16xf32> to vector<256x16xbf16>
    %cst_5 = arith.constant dense<0.000000e+00> : vector<256x32xf32>
    %7 = tpu.matmul %6, %3, %cst_5 {dimension_numbers = #tpu.dot_dimension_numbers<[1], [0], [0], [1], [0, 0, 1, 1], [], []>} : vector<256x16xbf16>, vector<16x32xbf16>, vector<256x32xf32> -> vector<256x32xf32>
    %8 = arith.addf %7, %4 : vector<256x32xf32>
    %cst_6 = arith.constant 0.000000e+00 : f32
    %9 = vector.broadcast %cst_6 : f32 to vector<256x32xf32>
    %10 = arith.maximumf %8, %9 : vector<256x32xf32>
    %c528 = arith.constant 528 : index
    %c0_7 = arith.constant 0 : index
    %11 = vector.load %arg1[%c528, %c0_7] : memref<592x256xbf16, #tpu.memory_space<vmem>>, vector<32x32xbf16>
    %c0_8 = arith.constant 0 : index
    %c0_9 = arith.constant 0 : index
    %12 = vector.load %arg2[%c0_8, %c0_9] : memref<264x128xf32, #tpu.memory_space<vmem>>, vector<1x32xf32>
    %c256 = arith.constant 256 : index
    %c0_10 = arith.constant 0 : index
    %13 = vector.load %arg1[%c256, %c0_10] : memref<592x256xbf16, #tpu.memory_space<vmem>>, vector<256x256xbf16>
    %14 = arith.truncf %10 : vector<256x32xf32> to vector<256x32xbf16>
    %cst_11 = arith.constant dense<0.000000e+00> : vector<256x32xf32>
    %15 = tpu.matmul %14, %11, %cst_11 {dimension_numbers = #tpu.dot_dimension_numbers<[1], [0], [0], [1], [0, 0, 1, 1], [], []>} : vector<256x32xbf16>, vector<32x32xbf16>, vector<256x32xf32> -> vector<256x32xf32>
    %16 = vector.broadcast %12 : vector<1x32xf32> to vector<256x32xf32>
    %17 = arith.addf %15, %16 : vector<256x32xf32>
    %18 = arith.truncf %17 : vector<256x32xf32> to vector<256x32xbf16>
    %cst_12 = arith.constant dense<0.000000e+00> : vector<256x32xf32>
    %19 = tpu.matmul %13, %18, %cst_12 {dimension_numbers = #tpu.dot_dimension_numbers<[1], [0], [0], [1], [0, 0, 1, 1], [], []>} : vector<256x256xbf16>, vector<256x32xbf16>, vector<256x32xf32> -> vector<256x32xf32>
    %cst_13 = arith.constant 0.000000e+00 : f32
    %20 = vector.broadcast %cst_13 : f32 to vector<256x32xf32>
    %21 = arith.maximumf %19, %20 : vector<256x32xf32>
    %c560 = arith.constant 560 : index
    %c0_14 = arith.constant 0 : index
    %22 = vector.load %arg1[%c560, %c0_14] : memref<592x256xbf16, #tpu.memory_space<vmem>>, vector<32x128xbf16>
    %c1 = arith.constant 1 : index
    %c0_15 = arith.constant 0 : index
    %23 = vector.load %arg2[%c1, %c0_15] : memref<264x128xf32, #tpu.memory_space<vmem>>, vector<1x128xf32>
    %24 = arith.truncf %21 : vector<256x32xf32> to vector<256x32xbf16>
    %cst_16 = arith.constant dense<0.000000e+00> : vector<256x128xf32>
    %25 = tpu.matmul %24, %22, %cst_16 {dimension_numbers = #tpu.dot_dimension_numbers<[1], [0], [0], [1], [0, 0, 1, 1], [], []>} : vector<256x32xbf16>, vector<32x128xbf16>, vector<256x128xf32> -> vector<256x128xf32>
    %26 = vector.broadcast %23 : vector<1x128xf32> to vector<256x128xf32>
    %27 = arith.addf %25, %26 : vector<256x128xf32>
    %cst_17 = arith.constant dense<0xFF800000> : vector<256xf32>
    %28 = vector.multi_reduction <maximumf>, %27, %cst_17 [1] : vector<256x128xf32> to vector<256xf32>
    %29 = vector.shape_cast %28 : vector<256xf32> to vector<256x1xf32>
    %30 = vector.broadcast %29 : vector<256x1xf32> to vector<256x128xf32>
    %31 = arith.subf %27, %30 : vector<256x128xf32>
    %32 = math.exp %31 : vector<256x128xf32>
    %cst_18 = arith.constant dense<0.000000e+00> : vector<256xf32>
    %33 = vector.multi_reduction <add>, %32, %cst_18 [1] : vector<256x128xf32> to vector<256xf32>
    %34 = vector.shape_cast %33 : vector<256xf32> to vector<256x1xf32>
    %35 = math.log %34 : vector<256x1xf32>
    %36 = vector.broadcast %35 : vector<256x1xf32> to vector<256x128xf32>
    %37 = arith.subf %31, %36 : vector<256x128xf32>
    %c0_19 = arith.constant 0 : index
    %c0_20 = arith.constant 0 : index
    %38 = vector.load %arg3[%c0_19, %c0_20] : memref<256x128xf32, #tpu.memory_space<vmem>>, vector<256x128xf32>
    tpu.vector_store %arg3[%c0_19, %c0_20], %37 {strides = array<i32>} : memref<256x128xf32, #tpu.memory_space<vmem>>, vector<256x128xf32>,
    return
  }
}

</mosaic_0001>

<bundles_post_ra>
// kernel: gcn_rw_mini_g_forward.1
= control target key start
LH: loop header
LB: loop body
LE: loop exit
PB: predicated region body
PF: predicated region fallthrough
CT: control target
= control target key end

     0   :  { %8 = vsyncpa [#allocation3], 0  ;;  %s2737_s12 = smov [#allocation2]   ;;  %s3465_s0 = inlined_call_operand.vmem [shape: f32[256,16], index: 0, kind: input, shape index: {}]   ;;  %s3466_s1 = inlined_call_operand.hbm [shape: bf16[592,256], index: 1, kind: input, shape index: {}]   ;;  %s3467_s2 = inlined_call_operand.vmem [shape: f32[264,128], index: 2, kind: input, shape index: {}]   ;;  %s3468_s3 = inlined_call_operand.vmem [shape: f32[256,128], index: 3, kind: output, shape index: {}]  }
   0x1   :  { %s16_s13 = sshll.u32 %s2737_s12, 4  ;;  %s17_s13 = int_to_ptr.vmem [resolvable:$true] %s16_s13 }
   0x2   :  { %s2723_s14 = scalar_lea.vmem %s17_s13, 9472  ;;  %p2728_p1 = scmp.lt.s32.totalorder %s17_s13, %s17_s13 }
   0x3   :  { %p2724_p0 = scmp.ne.s32.totalorder %s17_s13, %s2723_s14  ;;  %p2729_p2 = scmp.lt.s32.totalorder %s2723_s14, %s2723_s14 }
   0x5   :  { %p2730_p3 = por %p2729_p2, %p2728_p1 }
   0x7   :  { %p2731_p4 = pnand %p2730_p3, %p2724_p0 }
   0x9   :  { %2734 = shalt.err (!%p2731_p4)
}
   0xa   :  { %s2738_s15 = smov 128   ;;  %s2739_s16 = smov 8  }
   0xb   :  { %22 = dma.hbm_to_vmem [thread:$0]  %s3466_s1, 9472, %s17_s13, [#allocation3], %s2738_s15, %s2738_s15, %s2739_s16  }
   0xc   :  { %2735 = dma.done.wait [#allocation3], 9472  }
   0xd   :  { %2736 = vsyncadd [#allocation3], 4294957824  ;;  %v59_v0 = vld [vmem:[%s3465_s0 + $0xf0] sm:$0xff]  ;;  %v60_v1 = vld [vmem:[%s3465_s0 + $0xf8] sm:$0xff]  ;;  %vm486_vm0 = vcmask 130048   ;;  %vm797_vm1 = vcmask 261120  }
   0xe   :  { %v43_v2 = vld [vmem:[%s3465_s0 + $0x70] sm:$0xff]  ;;  %v76_v3 = vpack.c.bf16 %v60_v1, %v59_v0  ;;  %v44_v4 = vld [vmem:[%s3465_s0 + $0x78] sm:$0xff]  ;;  %v57_v5 = vld [vmem:[%s3465_s0 + $0xe0] sm:$0xff] }
   0xf   :  { %v58_v6 = vld [vmem:[%s3465_s0 + $0xe8] sm:$0xff]  ;;  %v68_v7 = vpack.c.bf16 %v44_v4, %v43_v2  ;;  %v41_v9 = vld [vmem:[%s3465_s0 + $0x60] sm:$0xff]  ;;  %v55_v11 = vld [vmem:[%s3465_s0 + $0xd0] sm:$0xff] }
  0x10   :  { %v75_v8 = vpack.c.bf16 %v58_v6, %v57_v5  ;;  %v42_v10 = vld [vmem:[%s3465_s0 + $0x68] sm:$0xff]  ;;  %2098 = vmatprep.subr.bf16.mxu0 %v76_v3  ;;  %v56_v12 = vld [vmem:[%s3465_s0 + $0xd8] sm:$0xff]  ;;  %v39_v15 = vld [vmem:[%s3465_s0 + $0x50] sm:$0xff] }
  0x11   :  { %2099 = vmatpush3.bf16.msra.mxu0 %v68_v7  ;;  %v67_v13 = vpack.c.bf16 %v42_v10, %v41_v9  ;;  %v74_v14 = vpack.c.bf16 %v56_v12, %v55_v11  ;;  %v40_v16 = vld [vmem:[%s3465_s0 + $0x58] sm:$0xff]  ;;  %v53_v17 = vld [vmem:[%s3465_s0 + $0xc0] sm:$0xff]  ;;  %v54_v18 = vld [vmem:[%s3465_s0 + $0xc8] sm:$0xff] }
  0x12   :  { %2100 = vmatprep.subr.bf16.mxu0 %v75_v8  ;;  %v66_v19 = vpack.c.bf16 %v40_v16, %v39_v15  ;;  %v73_v20 = vpack.c.bf16 %v54_v18, %v53_v17  ;;  %v37_v21 = vld [vmem:[%s3465_s0 + $0x40] sm:$0xff]  ;;  %v38_v22 = vld [vmem:[%s3465_s0 + $0x48] sm:$0xff]  ;;  %v51_v23 = vld [vmem:[%s3465_s0 + $0xb0] sm:$0xff] }
  0x13   :  { %v52_v24 = vld [vmem:[%s3465_s0 + $0xb8] sm:$0xff]  ;;  %v2488_v25 = vld [vmem:[#allocation2 + $0x4] ss:$8 sps:$4 sm:$0xff]   ;;  %v65_v26 = vpack.c.bf16 %v38_v22, %v37_v21  ;;  %v35_v27 = vld [vmem:[%s3465_s0 + $0x30] sm:$0xff] }
  0x14   :  { %v72_v28 = vpack.c.bf16 %v52_v24, %v51_v23  ;;  %v36_v29 = vld [vmem:[%s3465_s0 + $0x38] sm:$0xff]  ;;  %335 = vmatprep.mubr.bf16.mxu0 %v2488_v25  ;;  %v49_v30 = vld [vmem:[%s3465_s0 + $0xa0] sm:$0xff]  ;;  %v50_v31 = vld [vmem:[%s3465_s0 + $0xa8] sm:$0xff] }
  0x15   :  { %2101 = vmatpush3.bf16.msra.mxu0 %v67_v13  ;;  %v64_v32 = vpack.c.bf16 %v36_v29, %v35_v27  ;;  %v33_v33 = vld [vmem:[%s3465_s0 + $0x20] sm:$0xff]  ;;  %v71_v34 = vpack.c.bf16 %v50_v31, %v49_v30  ;;  %v34_v35 = vld [vmem:[%s3465_s0 + $0x28] sm:$0xff]  ;;  %v47_v36 = vld [vmem:[%s3465_s0 + $0x90] sm:$0xff] }
  0x16   :  { %2102 = vmatprep.subr.bf16.mxu0 %v74_v14  ;;  %v48_v37 = vld [vmem:[%s3465_s0 + $0x98] sm:$0xff]  ;;  %v63_v38 = vpack.c.bf16 %v34_v35, %v33_v33  ;;  %v31_v39 = vld [vmem:[%s3465_s0 + $0x10] sm:$0xff]  ;;  %v45_v42 = vld [vmem:[%s3465_s0 + $0x80] sm:$0xff] }
  0x17   :  { %v70_v40 = vpack.c.bf16 %v48_v37, %v47_v36  ;;  %v32_v41 = vld [vmem:[%s3465_s0 + $0x18] sm:$0xff]  ;;  %v46_v43 = vld [vmem:[%s3465_s0 + $0x88] sm:$0xff]  ;;  %v29_v45 = vld [vmem:[%s3465_s0] sm:$0xff] }
  0x18   :  { %v62_v44 = vpack.c.bf16 %v32_v41, %v31_v39  ;;  %v69_v46 = vpack.c.bf16 %v46_v43, %v45_v42  ;;  %v30_v47 = vld [vmem:[%s3465_s0 + $0x8] sm:$0xff]  ;;  %v2489_v50 = vld [vmem:[#allocation2 + $0x14] ss:$8 sps:$4 sm:$0xff]   ;;  %v2491_v52 = vld [vmem:[#allocation2 + $0x10] ss:$8 sps:$4 sm:$0xff]  }
  0x19   :  { %2103 = vmatpush3.bf16.msra.mxu0 %v66_v19  ;;  %v61_v48 = vpack.c.bf16 %v30_v47, %v29_v45  ;;  %v2486_v49 = vld [vmem:[#allocation2] ss:$8 sps:$4 sm:$0xff]   ;;  %v2492_v53 = vld [vmem:[#allocation2 + $0x24] ss:$8 sps:$4 sm:$0xff]   ;;  %v2495_v55 = vld [vmem:[#allocation2 + $0x34] ss:$8 sps:$4 sm:$0xff]  }
  0x1a   :  { %2104 = vmatprep.subr.bf16.mxu0 %v73_v20  ;;  %v2534_v51 = vld [vmem:[#allocation2 + $0x200] ss:$8 sps:$4 sm:$0xff]   ;;  %v2497_v56 = vld [vmem:[#allocation2 + $0x30] ss:$8 sps:$4 sm:$0xff]   ;;  %v2498_v57 = vld [vmem:[#allocation2 + $0x44] ss:$8 sps:$4 sm:$0xff]  }
  0x1b   :  { %2481 = vmatprep.subr.bf16.mxu1 %v2534_v51  ;;  %v2494_v54 = vld [vmem:[#allocation2 + $0x20] ss:$8 sps:$4 sm:$0xff]   ;;  %v2501_v59 = vld [vmem:[#allocation2 + $0x54] ss:$8 sps:$4 sm:$0xff]   ;;  %v2503_v60 = vld [vmem:[#allocation2 + $0x50] ss:$8 sps:$4 sm:$0xff]  }
  0x1c   :  { %2482 = vmatpush3.bf16.msra.mxu1 %v2534_v51  ;;  %v2500_v58 = vld [vmem:[#allocation2 + $0x40] ss:$8 sps:$4 sm:$0xff]   ;;  %v2504_v61 = vld [vmem:[#allocation2 + $0x64] ss:$8 sps:$4 sm:$0xff]   ;;  %v2507_v63 = vld [vmem:[#allocation2 + $0x74] ss:$8 sps:$4 sm:$0xff]  }
  0x1d   :  { %2105 = vmatpush3.bf16.msra.mxu0 %v65_v26  ;;  %v2506_v62 = vld [vmem:[#allocation2 + $0x60] ss:$8 sps:$4 sm:$0xff]   ;;  %v2509_v0 = vld [vmem:[#allocation2 + $0x70] ss:$8 sps:$4 sm:$0xff]   ;;  %v2510_v1 = vld [vmem:[#allocation2 + $0x84] ss:$8 sps:$4 sm:$0xff]  }
  0x1e   :  { %2106 = vmatprep.subr.bf16.mxu0 %v72_v28  ;;  %v2512_v2 = vld [vmem:[#allocation2 + $0x80] ss:$8 sps:$4 sm:$0xff]   ;;  %v2513_v3 = vld [vmem:[#allocation2 + $0x94] ss:$8 sps:$4 sm:$0xff]   ;;  %v2515_v4 = vld [vmem:[#allocation2 + $0x90] ss:$8 sps:$4 sm:$0xff]  }
  0x1f   :  { %v2516_v5 = vld [vmem:[#allocation2 + $0xa4] ss:$8 sps:$4 sm:$0xff]   ;;  %v2518_v6 = vld [vmem:[#allocation2 + $0xa0] ss:$8 sps:$4 sm:$0xff]   ;;  %v2519_v7 = vld [vmem:[#allocation2 + $0xb4] ss:$8 sps:$4 sm:$0xff]  }
  0x20   :  { %v2521_v8 = vld [vmem:[#allocation2 + $0xb0] ss:$8 sps:$4 sm:$0xff]   ;;  %v2522_v9 = vld [vmem:[#allocation2 + $0xc4] ss:$8 sps:$4 sm:$0xff]   ;;  %v2524_v10 = vld [vmem:[#allocation2 + $0xc0] ss:$8 sps:$4 sm:$0xff]  }
  0x21   :  { %2107 = vmatpush3.bf16.msra.mxu0 %v64_v32  ;;  %v2525_v11 = vld [vmem:[#allocation2 + $0xd4] ss:$8 sps:$4 sm:$0xff]   ;;  %v2527_v12 = vld [vmem:[#allocation2 + $0xd0] ss:$8 sps:$4 sm:$0xff]   ;;  %v2528_v13 = vld [vmem:[#allocation2 + $0xe4] ss:$8 sps:$4 sm:$0xff]  }
  0x22   :  { %2108 = vmatprep.subr.bf16.mxu0 %v71_v34  ;;  %v2530_v14 = vld [vmem:[#allocation2 + $0xe0] ss:$8 sps:$4 sm:$0xff]   ;;  %v2531_v15 = vld [vmem:[#allocation2 + $0xf4] ss:$8 sps:$4 sm:$0xff]   ;;  %v2533_v16 = vld [vmem:[#allocation2 + $0xf0] ss:$8 sps:$4 sm:$0xff]  }
  0x25   :  { %2109 = vmatpush3.bf16.msra.mxu0 %v63_v38 }
  0x26   :  { %2110 = vmatprep.subr.bf16.mxu0 %v70_v40 }
  0x29   :  { %2111 = vmatpush3.bf16.msra.mxu0 %v62_v44 }
  0x2a   :  { %2112 = vmatprep.subr.bf16.mxu0 %v69_v46 }
  0x2d   :  { %2113 = vmatpush3.bf16.msra.mxu0 %v61_v48 }
  0x2e   :  { %2375 = vmatprep.subr.bf16.mxu0 %v2534_v51 }
  0x30   :  { %336 = vmatmul.mubr.bf16.vlgmr.msra.gmra.mxu0 %v2486_v49 }
  0x31   :  { %343 = vmatprep.mubr.bf16.mxu0 %v2489_v50  ;;  %2376 = vmatpush3.bf16.msra.mxu0 %v2534_v51 }
  0x38   :  { %344 = vmatmul.mubr.bf16.gmra.mxu0 %v2491_v52 }
  0x39   :  { %351 = vmatprep.mubr.bf16.mxu0 %v2492_v53 }
  0x40   :  { %352 = vmatmul.mubr.bf16.gmra.mxu0 %v2494_v54 }
  0x41   :  { %359 = vmatprep.mubr.bf16.mxu0 %v2495_v55 }
  0x48   :  { %360 = vmatmul.mubr.bf16.gmra.mxu0 %v2497_v56 }
  0x49   :  { %367 = vmatprep.mubr.bf16.mxu0 %v2498_v57 }
  0x50   :  { %368 = vmatmul.mubr.bf16.gmra.mxu0 %v2500_v58 }
  0x51   :  { %375 = vmatprep.mubr.bf16.mxu0 %v2501_v59 }
  0x58   :  { %376 = vmatmul.mubr.bf16.gmra.mxu0 %v2503_v60 }
  0x59   :  { %383 = vmatprep.mubr.bf16.mxu0 %v2504_v61 }
  0x60   :  { %384 = vmatmul.mubr.bf16.gmra.mxu0 %v2506_v62 }
  0x61   :  { %391 = vmatprep.mubr.bf16.mxu0 %v2507_v63 }
  0x68   :  { %392 = vmatmul.mubr.bf16.gmra.mxu0 %v2509_v0 }
  0x69   :  { %399 = vmatprep.mubr.bf16.mxu0 %v2510_v1 }
  0x70   :  { %400 = vmatmul.mubr.bf16.gmra.mxu0 %v2512_v2 }
  0x71   :  { %407 = vmatprep.mubr.bf16.mxu0 %v2513_v3 }
  0x78   :  { %408 = vmatmul.mubr.bf16.gmra.mxu0 %v2515_v4 }
  0x79   :  { %415 = vmatprep.mubr.bf16.mxu0 %v2516_v5 }
  0x80   :  { %416 = vmatmul.mubr.bf16.gmra.mxu0 %v2518_v6 }
  0x81   :  { %423 = vmatprep.mubr.bf16.mxu0 %v2519_v7 }
  0x88   :  { %424 = vmatmul.mubr.bf16.gmra.mxu0 %v2521_v8 }
  0x89   :  { %431 = vmatprep.mubr.bf16.mxu0 %v2522_v9 }
  0x90   :  { %432 = vmatmul.mubr.bf16.gmra.mxu0 %v2524_v10 }
  0x91   :  { %439 = vmatprep.mubr.bf16.mxu0 %v2525_v11 }
  0x98   :  { %440 = vmatmul.mubr.bf16.gmra.mxu0 %v2527_v12 }
  0x99   :  { %447 = vmatprep.mubr.bf16.mxu0 %v2528_v13 }
  0xa0   :  { %448 = vmatmul.mubr.bf16.gmra.mxu0 %v2530_v14 }
  0xa1   :  { %455 = vmatprep.mubr.bf16.mxu0 %v2531_v15 }
  0xa8   :  { %456 = vmatmul.mubr.bf16.gmra.mxu0 %v2533_v16 }
  0xf0   :  { %v2114_v17 = vpop.f32.mrf.mxu0 }
  0xf2   :  { %v2115_v18 = vpop.f32.mrf.mxu0 }
  0xf3   :  { %v2116_v21 = vadd.f32 %v2115_v18, %v2114_v17 }
  0xf4   :  { %v2117_v19 = vpop.f32.mrf.mxu0 }
  0xf6   :  { %v2118_v20 = vpop.f32.mrf.mxu0 }
  0xf7   :  { %v2119_v22 = vadd.f32 %v2118_v20, %v2117_v19 }
  0xf8   :  { %v2120_v23 = vpop.f32.mrf.mxu0 }
  0xf9   :  { %v464_v24 = vpack.c.bf16 %v2119_v22, %v2116_v21 }
  0xfa   :  { %v2121_v25 = vpop.f32.mrf.mxu0 }
  0xfb   :  { %2377 = vmatprep.mubr.msk.bf16.mxu0 %vm486_vm0, %v464_v24  ;;  %v2122_v28 = vadd.f32 %v2121_v25, %v2120_v23 }
  0xfc   :  { %v2123_v26 = vpop.f32.mrf.mxu0 }
  0xfe   :  { %v2124_v27 = vpop.f32.mrf.mxu0 }
  0xff   :  { %v2125_v29 = vadd.f32 %v2124_v27, %v2123_v26 }
 0x100   :  { %v2126_v30 = vpop.f32.mrf.mxu0 }
 0x101   :  { %v465_v31 = vpack.c.bf16 %v2125_v29, %v2122_v28  ;;  %v2535_v29 = vld [vmem:[#allocation2 + $0x220] ss:$8 sps:$4 sm:$0xff]  }
 0x102   :  { %v2127_v32 = vpop.f32.mrf.mxu0  ;;  %2409 = vmatprep.subr.bf16.mxu1 %v2535_v29 }
 0x103   :  { %2378 = vmatmul.mubr.msk.bf16.vlgmr.msra.gmra.mxu0 %vm486_vm0, %v465_v31  ;;  %v2128_v35 = vadd.f32 %v2127_v32, %v2126_v30 }
 0x104   :  { %v2129_v33 = vpop.f32.mrf.mxu0 }
 0x106   :  { %v2130_v34 = vpop.f32.mrf.mxu0 }
 0x107   :  { %v2131_v36 = vadd.f32 %v2130_v34, %v2129_v33  ;;  %v2536_v33 = vld [vmem:[#allocation2 + $0x210] ss:$8 sps:$4 sm:$0xff]  }
 0x108   :  { %v2132_v37 = vpop.f32.mrf.mxu0 }
 0x109   :  { %v466_v38 = vpack.c.bf16 %v2131_v36, %v2128_v35 }
 0x10a   :  { %v2133_v39 = vpop.f32.mrf.mxu0 }
 0x10b   :  { %2381 = vmatprep.mubr.msk.bf16.mxu0 %vm486_vm0, %v466_v38  ;;  %v2134_v42 = vadd.f32 %v2133_v39, %v2132_v37 }
 0x10c   :  { %v2135_v40 = vpop.f32.mrf.mxu0 }
 0x10e   :  { %v2136_v41 = vpop.f32.mrf.mxu0 }
 0x10f   :  { %v2137_v43 = vadd.f32 %v2136_v41, %v2135_v40 }
 0x110   :  { %v2138_v44 = vpop.f32.mrf.mxu0 }
 0x111   :  { %v467_v45 = vpack.c.bf16 %v2137_v43, %v2134_v42 }
 0x112   :  { %v2139_v46 = vpop.f32.mrf.mxu0 }
 0x113   :  { %2382 = vmatmul.mubr.msk.bf16.gmra.mxu0 %vm486_vm0, %v467_v45  ;;  %v2140_v49 = vadd.f32 %v2139_v46, %v2138_v44 }
 0x114   :  { %v2141_v47 = vpop.f32.mrf.mxu0 }
 0x116   :  { %v2142_v48 = vpop.f32.mrf.mxu0 }
 0x117   :  { %v2143_v50 = vadd.f32 %v2142_v48, %v2141_v47 }
 0x118   :  { %v2144_v51 = vpop.f32.mrf.mxu0 }
 0x119   :  { %v468_v52 = vpack.c.bf16 %v2143_v50, %v2140_v49 }
 0x11a   :  { %v2145_v53 = vpop.f32.mrf.mxu0 }
 0x11b   :  { %2385 = vmatprep.mubr.msk.bf16.mxu1 %vm486_vm0, %v468_v52  ;;  %v2146_v56 = vadd.f32 %v2145_v53, %v2144_v51 }
 0x11c   :  { %v2147_v54 = vpop.f32.mrf.mxu0 }
 0x11e   :  { %v2148_v55 = vpop.f32.mrf.mxu0 }
 0x11f   :  { %v2149_v57 = vadd.f32 %v2148_v55, %v2147_v54 }
 0x120   :  { %v2150_v58 = vpop.f32.mrf.mxu0 }
 0x121   :  { %v469_v59 = vpack.c.bf16 %v2149_v57, %v2146_v56 }
 0x122   :  { %v2151_v60 = vpop.f32.mrf.mxu0 }
 0x123   :  { %2386 = vmatmul.mubr.msk.bf16.vlgmr.msra.gmra.mxu1 %vm486_vm0, %v469_v59  ;;  %v2152_v63 = vadd.f32 %v2151_v60, %v2150_v58 }
 0x124   :  { %v2153_v61 = vpop.f32.mrf.mxu0  ;;  %2410 = vmatpush3.bf16.msra.mxu1 %v2535_v29 }
 0x125   :  { %2411 = vmatprep.subr.bf16.mxu1 %v2536_v33 }
 0x126   :  { %v2154_v62 = vpop.f32.mrf.mxu0 }
 0x127   :  { %v2155_v0 = vadd.f32 %v2154_v62, %v2153_v61 }
 0x128   :  { %v2156_v1 = vpop.f32.mrf.mxu0  ;;  %2412 = vmatpush3.bf16.msra.mxu1 %v2536_v33 }
 0x129   :  { %v470_v2 = vpack.c.bf16 %v2155_v0, %v2152_v63 }
 0x12a   :  { %v2157_v3 = vpop.f32.mrf.mxu0 }
 0x12b   :  { %2389 = vmatprep.mubr.msk.bf16.mxu1 %vm486_vm0, %v470_v2  ;;  %v2158_v6 = vadd.f32 %v2157_v3, %v2156_v1 }
 0x12c   :  { %v2159_v4 = vpop.f32.mrf.mxu0 }
 0x12e   :  { %v2160_v5 = vpop.f32.mrf.mxu0 }
 0x12f   :  { %v2161_v7 = vadd.f32 %v2160_v5, %v2159_v4  ;;  %v111_v5 = vld [vmem:[%s3467_s2 + $0x8] sm:$0xff] }
 0x130   :  { %v2162_v8 = vpop.f32.mrf.mxu0 }
 0x131   :  { %v471_v9 = vpack.c.bf16 %v2161_v7, %v2158_v6  ;;  %v114_v6 = vld [vmem:[%s3467_s2 + $0x20] sm:$0xff]  ;;  %v113_v7 = vld [vmem:[%s3467_s2 + $0x18] sm:$0xff] }
 0x132   :  { %v2163_v10 = vpop.f32.mrf.mxu0 }
 0x133   :  { %2390 = vmatmul.mubr.msk.bf16.gmra.mxu1 %vm486_vm0, %v471_v9  ;;  %v2164_v13 = vadd.f32 %v2163_v10, %v2162_v8  ;;  %v112_v9 = vld [vmem:[%s3467_s2 + $0x10] sm:$0xff] }
 0x134   :  { %v2165_v11 = vpop.f32.mrf.mxu0 }
 0x136   :  { %v2166_v12 = vpop.f32.mrf.mxu0 }
 0x137   :  { %v2167_v14 = vadd.f32 %v2166_v12, %v2165_v11 }
 0x138   :  { %v2168_v15 = vpop.f32.mrf.mxu0 }
 0x139   :  { %v472_v16 = vpack.c.bf16 %v2167_v14, %v2164_v13 }
 0x13a   :  { %v2169_v17 = vpop.f32.mrf.mxu0 }
 0x13b   :  { %2393 = vmatprep.mubr.msk.bf16.mxu1 %vm486_vm0, %v472_v16  ;;  %v2170_v20 = vadd.f32 %v2169_v17, %v2168_v15 }
 0x13c   :  { %v2171_v18 = vpop.f32.mrf.mxu0 }
 0x13e   :  { %v2172_v19 = vpop.f32.mrf.mxu0 }
 0x13f   :  { %v2173_v21 = vadd.f32 %v2172_v19, %v2171_v18 }
 0x140   :  { %v2174_v22 = vpop.f32.mrf.mxu0 }
 0x141   :  { %v473_v23 = vpack.c.bf16 %v2173_v21, %v2170_v20 }
 0x142   :  { %v2175_v24 = vpop.f32.mrf.mxu0 }
 0x143   :  { %2394 = vmatmul.mubr.msk.bf16.gmra.mxu1 %vm486_vm0, %v473_v23  ;;  %v2176_v27 = vadd.f32 %v2175_v24, %v2174_v22  ;;  %v115_v23 = vld [vmem:[%s3467_s2 + $0x28] sm:$0xff]  ;;  %v118_v24 = vld [vmem:[%s3467_s2 + $0x40] sm:$0xff] }
 0x144   :  { %v2177_v25 = vpop.f32.mrf.mxu0 }
 0x146   :  { %v2178_v26 = vpop.f32.mrf.mxu0 }
 0x147   :  { %v2179_v28 = vadd.f32 %v2178_v26, %v2177_v25  ;;  %v117_v25 = vld [vmem:[%s3467_s2 + $0x38] sm:$0xff] }
 0x148   :  { %v2180_v30 = vpop.f32.mrf.mxu0 }
 0x149   :  { %v474_v31 = vpack.c.bf16 %v2179_v28, %v2176_v27  ;;  %v116_v27 = vld [vmem:[%s3467_s2 + $0x30] sm:$0xff] }
 0x14a   :  { %v2181_v32 = vpop.f32.mrf.mxu0 }
 0x14b   :  { %2397 = vmatprep.mubr.msk.bf16.mxu1 %vm486_vm0, %v474_v31  ;;  %v2182_v36 = vadd.f32 %v2181_v32, %v2180_v30 }
 0x14c   :  { %v2183_v34 = vpop.f32.mrf.mxu0 }
 0x14e   :  { %v2184_v35 = vpop.f32.mrf.mxu0 }
 0x14f   :  { %v2185_v37 = vadd.f32 %v2184_v35, %v2183_v34 }
 0x150   :  { %v2186_v38 = vpop.f32.mrf.mxu0 }
 0x151   :  { %v475_v39 = vpack.c.bf16 %v2185_v37, %v2182_v36 }
 0x152   :  { %v2187_v40 = vpop.f32.mrf.mxu0 }
 0x153   :  { %2398 = vmatmul.mubr.msk.bf16.gmra.mxu1 %vm486_vm0, %v475_v39  ;;  %v2188_v43 = vadd.f32 %v2187_v40, %v2186_v38 }
 0x154   :  { %v2189_v41 = vpop.f32.mrf.mxu0 }
 0x156   :  { %v2190_v42 = vpop.f32.mrf.mxu0 }
 0x157   :  { %v2191_v44 = vadd.f32 %v2190_v42, %v2189_v41  ;;  %v119_v41 = vld [vmem:[%s3467_s2 + $0x48] sm:$0xff]  ;;  %v122_v42 = vld [vmem:[%s3467_s2 + $0x60] sm:$0xff] }
 0x158   :  { %v2192_v45 = vpop.f32.mrf.mxu0 }
 0x159   :  { %v476_v46 = vpack.c.bf16 %v2191_v44, %v2188_v43  ;;  %v121_v43 = vld [vmem:[%s3467_s2 + $0x58] sm:$0xff] }
 0x15a   :  { %v2193_v47 = vpop.f32.mrf.mxu0 }
 0x15b   :  { %2401 = vmatprep.mubr.msk.bf16.mxu1 %vm486_vm0, %v476_v46  ;;  %v2194_v50 = vadd.f32 %v2193_v47, %v2192_v45  ;;  %v120_v45 = vld [vmem:[%s3467_s2 + $0x50] sm:$0xff] }
 0x15c   :  { %v2195_v48 = vpop.f32.mrf.mxu0 }
 0x15e   :  { %v2196_v49 = vpop.f32.mrf.mxu0 }
 0x15f   :  { %v2197_v51 = vadd.f32 %v2196_v49, %v2195_v48 }
 0x160   :  { %v2198_v52 = vpop.f32.mrf.mxu0 }
 0x161   :  { %v477_v53 = vpack.c.bf16 %v2197_v51, %v2194_v50 }
 0x162   :  { %v2199_v54 = vpop.f32.mrf.mxu0 }
 0x163   :  { %2402 = vmatmul.mubr.msk.bf16.gmra.mxu1 %vm486_vm0, %v477_v53  ;;  %v2200_v57 = vadd.f32 %v2199_v54, %v2198_v52 }
 0x164   :  { %v2201_v55 = vpop.f32.mrf.mxu0 }
 0x166   :  { %v2202_v56 = vpop.f32.mrf.mxu0 }
 0x167   :  { %v2203_v58 = vadd.f32 %v2202_v56, %v2201_v55 }
 0x168   :  { %v2204_v59 = vpop.f32.mrf.mxu0 }
 0x169   :  { %v478_v60 = vpack.c.bf16 %v2203_v58, %v2200_v57 }
 0x16a   :  { %v2205_v61 = vpop.f32.mrf.mxu0 }
 0x16b   :  { %2405 = vmatprep.mubr.msk.bf16.mxu1 %vm486_vm0, %v478_v60  ;;  %v2206_v0 = vadd.f32 %v2205_v61, %v2204_v59  ;;  %v123_v59 = vld [vmem:[%s3467_s2 + $0x68] sm:$0xff]  ;;  %v126_v60 = vld [vmem:[%s3467_s2 + $0x80] sm:$0xff]  ;;  %v125_v61 = vld [vmem:[%s3467_s2 + $0x78] sm:$0xff] }
 0x16c   :  { %v2207_v62 = vpop.f32.mrf.mxu0 }
 0x16e   :  { %v2208_v63 = vpop.f32.mrf.mxu0 }
 0x16f   :  { %v2209_v1 = vadd.f32 %v2208_v63, %v2207_v62  ;;  %v124_v63 = vld [vmem:[%s3467_s2 + $0x70] sm:$0xff] }
 0x171   :  { %v479_v2 = vpack.c.bf16 %v2209_v1, %v2206_v0 }
 0x173   :  { %2406 = vmatmul.mubr.msk.bf16.gmra.mxu1 %vm486_vm0, %v479_v2 }
 0x1c3   :  { %v2379_v3 = vpop.f32.mrf.mxu0 }
 0x1c4   :  { %v578_v12 = vadd.f32 %v2379_v3, %v113_v7 }
 0x1c5   :  { %v569_v4 = vpop.f32.mrf.mxu0 }
 0x1c6   :  { %v570_v10 = vadd.f32 %v569_v4, %v111_v5  ;;  %v698_v18 = vmax.f32 %v578_v12, 0.0 }
 0x1c7   :  { %v2380_v8 = vpop.f32.mrf.mxu0 }
 0x1c8   :  { %v581_v11 = vadd.f32 %v2380_v8, %v114_v6  ;;  %v696_v16 = vmax.f32 %v570_v10, 0.0 }
 0x1c9   :  { %v572_v13 = vpop.f32.mrf.mxu0 }
 0x1ca   :  { %v573_v14 = vadd.f32 %v572_v13, %v112_v9  ;;  %v699_v15 = vmax.f32 %v581_v11, 0.0  ;;  %v127_v13 = vld [vmem:[%s3467_s2 + $0x88] sm:$0xff] }
 0x1cc   :  { %v697_v17 = vmax.f32 %v573_v14, 0.0  ;;  %v766_v20 = vpack.c.bf16 %v699_v15, %v698_v18  ;;  %v130_v14 = vld [vmem:[%s3467_s2 + $0xa0] sm:$0xff]  ;;  %v129_v15 = vld [vmem:[%s3467_s2 + $0x98] sm:$0xff] }
 0x1ce   :  { %v765_v19 = vpack.c.bf16 %v697_v17, %v696_v16  ;;  %v128_v17 = vld [vmem:[%s3467_s2 + $0x90] sm:$0xff] }
 0x1d0   :  { %2413 = vmatprep.mubr.msk.bf16.mxu1 %vm797_vm1, %v765_v19 }
 0x1d1   :  { %2414 = vmatmul.mubr.msk.bf16.vlgmr.msra.gmra.mxu1 %vm797_vm1, %v766_v20 }
 0x1d3   :  { %v2383_v21 = vpop.f32.mrf.mxu0 }
 0x1d4   :  { %v594_v30 = vadd.f32 %v2383_v21, %v117_v25 }
 0x1d5   :  { %v585_v22 = vpop.f32.mrf.mxu0 }
 0x1d6   :  { %v586_v28 = vadd.f32 %v585_v22, %v115_v23  ;;  %v702_v36 = vmax.f32 %v594_v30, 0.0 }
 0x1d7   :  { %v2384_v26 = vpop.f32.mrf.mxu0 }
 0x1d8   :  { %v597_v29 = vadd.f32 %v2384_v26, %v118_v24  ;;  %v700_v34 = vmax.f32 %v586_v28, 0.0 }
 0x1d9   :  { %v588_v31 = vpop.f32.mrf.mxu0 }
 0x1da   :  { %v589_v32 = vadd.f32 %v588_v31, %v116_v27  ;;  %v703_v33 = vmax.f32 %v597_v29, 0.0  ;;  %v131_v31 = vld [vmem:[%s3467_s2 + $0xa8] sm:$0xff] }
 0x1dc   :  { %v701_v35 = vmax.f32 %v589_v32, 0.0  ;;  %v768_v38 = vpack.c.bf16 %v703_v33, %v702_v36  ;;  %v134_v32 = vld [vmem:[%s3467_s2 + $0xc0] sm:$0xff]  ;;  %v133_v33 = vld [vmem:[%s3467_s2 + $0xb8] sm:$0xff] }
 0x1de   :  { %v767_v37 = vpack.c.bf16 %v701_v35, %v700_v34  ;;  %v132_v35 = vld [vmem:[%s3467_s2 + $0xb0] sm:$0xff] }
 0x1e0   :  { %2417 = vmatprep.mubr.msk.bf16.mxu1 %vm797_vm1, %v767_v37 }
 0x1e1   :  { %2418 = vmatmul.mubr.msk.bf16.gmra.mxu1 %vm797_vm1, %v768_v38 }
 0x1e3   :  { %v2387_v39 = vpop.f32.mrf.mxu1 }
 0x1e4   :  { %v610_v48 = vadd.f32 %v2387_v39, %v121_v43 }
 0x1e5   :  { %v601_v40 = vpop.f32.mrf.mxu1 }
 0x1e6   :  { %v602_v46 = vadd.f32 %v601_v40, %v119_v41  ;;  %v706_v54 = vmax.f32 %v610_v48, 0.0 }
 0x1e7   :  { %v2388_v44 = vpop.f32.mrf.mxu1 }
 0x1e8   :  { %v613_v47 = vadd.f32 %v2388_v44, %v122_v42  ;;  %v704_v52 = vmax.f32 %v602_v46, 0.0 }
 0x1e9   :  { %v604_v49 = vpop.f32.mrf.mxu1 }
 0x1ea   :  { %v605_v50 = vadd.f32 %v604_v49, %v120_v45  ;;  %v707_v51 = vmax.f32 %v613_v47, 0.0  ;;  %v135_v49 = vld [vmem:[%s3467_s2 + $0xc8] sm:$0xff] }
 0x1ec   :  { %v705_v53 = vmax.f32 %v605_v50, 0.0  ;;  %v770_v56 = vpack.c.bf16 %v707_v51, %v706_v54  ;;  %v138_v50 = vld [vmem:[%s3467_s2 + $0xe0] sm:$0xff]  ;;  %v137_v51 = vld [vmem:[%s3467_s2 + $0xd8] sm:$0xff] }
 0x1ee   :  { %v769_v55 = vpack.c.bf16 %v705_v53, %v704_v52  ;;  %v136_v53 = vld [vmem:[%s3467_s2 + $0xd0] sm:$0xff] }
 0x1f0   :  { %2421 = vmatprep.mubr.msk.bf16.mxu1 %vm797_vm1, %v769_v55 }
 0x1f1   :  { %2422 = vmatmul.mubr.msk.bf16.gmra.mxu1 %vm797_vm1, %v770_v56 }
 0x1f3   :  { %v2391_v57 = vpop.f32.mrf.mxu1 }
 0x1f4   :  { %v626_v2 = vadd.f32 %v2391_v57, %v125_v61 }
 0x1f5   :  { %v617_v58 = vpop.f32.mrf.mxu1 }
 0x1f6   :  { %v618_v0 = vadd.f32 %v617_v58, %v123_v59  ;;  %v710_v8 = vmax.f32 %v626_v2, 0.0 }
 0x1f7   :  { %v2392_v62 = vpop.f32.mrf.mxu1 }
 0x1f8   :  { %v629_v1 = vadd.f32 %v2392_v62, %v126_v60  ;;  %v708_v6 = vmax.f32 %v618_v0, 0.0 }
 0x1f9   :  { %v620_v3 = vpop.f32.mrf.mxu1 }
 0x1fa   :  { %v621_v4 = vadd.f32 %v620_v3, %v124_v63  ;;  %v711_v5 = vmax.f32 %v629_v1, 0.0  ;;  %v139_v3 = vld [vmem:[%s3467_s2 + $0xe8] sm:$0xff] }
 0x1fc   :  { %v709_v7 = vmax.f32 %v621_v4, 0.0  ;;  %v772_v10 = vpack.c.bf16 %v711_v5, %v710_v8  ;;  %v142_v4 = vld [vmem:[%s3467_s2 + $0x100] sm:$0xff]  ;;  %v141_v5 = vld [vmem:[%s3467_s2 + $0xf8] sm:$0xff] }
 0x1fe   :  { %v771_v9 = vpack.c.bf16 %v709_v7, %v708_v6  ;;  %v140_v7 = vld [vmem:[%s3467_s2 + $0xf0] sm:$0xff] }
 0x200   :  { %2425 = vmatprep.mubr.msk.bf16.mxu1 %vm797_vm1, %v771_v9 }
 0x201   :  { %2426 = vmatmul.mubr.msk.bf16.gmra.mxu1 %vm797_vm1, %v772_v10 }
 0x203   :  { %v2395_v11 = vpop.f32.mrf.mxu1 }
 0x204   :  { %v642_v20 = vadd.f32 %v2395_v11, %v129_v15 }
 0x205   :  { %v633_v12 = vpop.f32.mrf.mxu1 }
 0x206   :  { %v634_v18 = vadd.f32 %v633_v12, %v127_v13  ;;  %v714_v26 = vmax.f32 %v642_v20, 0.0  ;;  %v2990_v20 = vld [vmem:[%s3467_s2] ss:$0 sm:$0xff] }
 0x207   :  { %v2396_v16 = vpop.f32.mrf.mxu1 }
 0x208   :  { %v645_v19 = vadd.f32 %v2396_v16, %v130_v14  ;;  %v712_v24 = vmax.f32 %v634_v18, 0.0 }
 0x209   :  { %v636_v21 = vpop.f32.mrf.mxu1 }
 0x20a   :  { %v637_v22 = vadd.f32 %v636_v21, %v128_v17  ;;  %v715_v23 = vmax.f32 %v645_v19, 0.0 }
 0x20c   :  { %v713_v25 = vmax.f32 %v637_v22, 0.0  ;;  %v774_v28 = vpack.c.bf16 %v715_v23, %v714_v26 }
 0x20e   :  { %v773_v27 = vpack.c.bf16 %v713_v25, %v712_v24 }
 0x210   :  { %2429 = vmatprep.mubr.msk.bf16.mxu1 %vm797_vm1, %v773_v27 }
 0x211   :  { %2430 = vmatmul.mubr.msk.bf16.gmra.mxu1 %vm797_vm1, %v774_v28 }
 0x213   :  { %v2399_v29 = vpop.f32.mrf.mxu1 }
 0x214   :  { %v658_v38 = vadd.f32 %v2399_v29, %v133_v33 }
 0x215   :  { %v649_v30 = vpop.f32.mrf.mxu1 }
 0x216   :  { %v650_v36 = vadd.f32 %v649_v30, %v131_v31  ;;  %v718_v44 = vmax.f32 %v658_v38, 0.0 }
 0x217   :  { %v2400_v34 = vpop.f32.mrf.mxu1 }
 0x218   :  { %v661_v37 = vadd.f32 %v2400_v34, %v134_v32  ;;  %v716_v42 = vmax.f32 %v650_v36, 0.0  ;;  %v2539_v36 = vld [vmem:[#allocation2 + $0x104] ss:$8 sps:$4 sm:$0xff]  }
 0x219   :  { %v652_v39 = vpop.f32.mrf.mxu1 }
 0x21a   :  { %v653_v40 = vadd.f32 %v652_v39, %v132_v35  ;;  %v719_v41 = vmax.f32 %v661_v37, 0.0 }
 0x21c   :  { %v717_v43 = vmax.f32 %v653_v40, 0.0  ;;  %v776_v46 = vpack.c.bf16 %v719_v41, %v718_v44 }
 0x21e   :  { %v775_v45 = vpack.c.bf16 %v717_v43, %v716_v42 }
 0x220   :  { %2433 = vmatprep.mubr.msk.bf16.mxu1 %vm797_vm1, %v775_v45 }
 0x221   :  { %2434 = vmatmul.mubr.msk.bf16.gmra.mxu1 %vm797_vm1, %v776_v46 }
 0x223   :  { %v2403_v47 = vpop.f32.mrf.mxu1 }
 0x224   :  { %v674_v56 = vadd.f32 %v2403_v47, %v137_v51 }
 0x225   :  { %v665_v48 = vpop.f32.mrf.mxu1 }
 0x226   :  { %v666_v54 = vadd.f32 %v665_v48, %v135_v49  ;;  %v722_v62 = vmax.f32 %v674_v56, 0.0 }
 0x227   :  { %v2404_v52 = vpop.f32.mrf.mxu1 }
 0x228   :  { %v677_v55 = vadd.f32 %v2404_v52, %v138_v50  ;;  %v720_v60 = vmax.f32 %v666_v54, 0.0 }
 0x229   :  { %v668_v57 = vpop.f32.mrf.mxu1 }
 0x22a   :  { %v669_v58 = vadd.f32 %v668_v57, %v136_v53  ;;  %v723_v59 = vmax.f32 %v677_v55, 0.0 }
 0x22c   :  { %v721_v61 = vmax.f32 %v669_v58, 0.0  ;;  %v778_v0 = vpack.c.bf16 %v723_v59, %v722_v62 }
 0x22e   :  { %v777_v63 = vpack.c.bf16 %v721_v61, %v720_v60 }
 0x230   :  { %2437 = vmatprep.mubr.msk.bf16.mxu1 %vm797_vm1, %v777_v63 }
 0x231   :  { %2438 = vmatmul.mubr.msk.bf16.gmra.mxu1 %vm797_vm1, %v778_v0 }
 0x233   :  { %v2407_v1 = vpop.f32.mrf.mxu1 }
 0x234   :  { %v690_v10 = vadd.f32 %v2407_v1, %v141_v5 }
 0x235   :  { %v681_v2 = vpop.f32.mrf.mxu1 }
 0x236   :  { %v682_v8 = vadd.f32 %v681_v2, %v139_v3  ;;  %v726_v16 = vmax.f32 %v690_v10, 0.0 }
 0x237   :  { %v2408_v6 = vpop.f32.mrf.mxu1 }
 0x238   :  { %v693_v9 = vadd.f32 %v2408_v6, %v142_v4  ;;  %v724_v14 = vmax.f32 %v682_v8, 0.0 }
 0x239   :  { %v684_v11 = vpop.f32.mrf.mxu1 }
 0x23a   :  { %v685_v12 = vadd.f32 %v684_v11, %v140_v7  ;;  %v727_v13 = vmax.f32 %v693_v9, 0.0 }
 0x23c   :  { %v725_v15 = vmax.f32 %v685_v12, 0.0  ;;  %v780_v18 = vpack.c.bf16 %v727_v13, %v726_v16 }
 0x23e   :  { %v779_v17 = vpack.c.bf16 %v725_v15, %v724_v14 }
 0x240   :  { %2441 = vmatprep.mubr.msk.bf16.mxu1 %vm797_vm1, %v779_v17 }
 0x241   :  { %2442 = vmatmul.mubr.msk.bf16.gmra.mxu1 %vm797_vm1, %v780_v18 }
 0x242   :  { %1215 = vmatprep.mubr.bf16.mxu1 %v2539_v36 }
 0x291   :  { %v2415_v19 = vpop.f32.mrf.mxu1 }
 0x292   :  { %v2993_v23 = vadd.f32 %v2415_v19, %v2990_v20 }
 0x293   :  { %v880_v21 = vpop.f32.mrf.mxu1 }
 0x294   :  { %v2999_v26 = vadd.f32 %v2990_v20, %v880_v21 }
 0x295   :  { %v2416_v22 = vpop.f32.mrf.mxu1 }
 0x296   :  { %v2996_v24 = vadd.f32 %v2416_v22, %v2990_v20 }
 0x297   :  { %v883_v25 = vpop.f32.mrf.mxu1 }
 0x298   :  { %v1008_v27 = vpack.c.bf16 %v2996_v24, %v2993_v23  ;;  %v3004_v28 = vadd.f32 %v2990_v20, %v883_v25  ;;  %v2549_v23 = vld [vmem:[#allocation2 + $0x144] ss:$8 sps:$4 sm:$0xff]   ;;  %v2551_v24 = vld [vmem:[#allocation2 + $0x140] ss:$8 sps:$4 sm:$0xff]  }
 0x29a   :  { %v1007_v29 = vpack.c.bf16 %v3004_v28, %v2999_v26  ;;  %v2554_v26 = vld [vmem:[#allocation2 + $0x150] ss:$8 sps:$4 sm:$0xff]   ;;  %v2555_v28 = vld [vmem:[#allocation2 + $0x164] ss:$8 sps:$4 sm:$0xff]  }
 0x2a1   :  { %v2419_v30 = vpop.f32.mrf.mxu1 }
 0x2a2   :  { %v3009_v33 = vadd.f32 %v2419_v30, %v2990_v20 }
 0x2a3   :  { %v896_v31 = vpop.f32.mrf.mxu1 }
 0x2a4   :  { %v3015_v37 = vadd.f32 %v2990_v20, %v896_v31 }
 0x2a5   :  { %v2420_v32 = vpop.f32.mrf.mxu1 }
 0x2a6   :  { %v3012_v34 = vadd.f32 %v2420_v32, %v2990_v20 }
 0x2a7   :  { %v899_v35 = vpop.f32.mrf.mxu1 }
 0x2a8   :  { %v1010_v38 = vpack.c.bf16 %v3012_v34, %v3009_v33  ;;  %v3020_v39 = vadd.f32 %v2990_v20, %v899_v35  ;;  %v2537_v33 = vld [vmem:[#allocation2 + $0x100] ss:$8 sps:$4 sm:$0xff]   ;;  %v2540_v34 = vld [vmem:[#allocation2 + $0x114] ss:$8 sps:$4 sm:$0xff]  }
 0x2aa   :  { %v1009_v40 = vpack.c.bf16 %v3020_v39, %v3015_v37  ;;  %v2543_v37 = vld [vmem:[#allocation2 + $0x124] ss:$8 sps:$4 sm:$0xff]   ;;  %v2546_v39 = vld [vmem:[#allocation2 + $0x134] ss:$8 sps:$4 sm:$0xff]  }
 0x2b1   :  { %v2423_v41 = vpop.f32.mrf.mxu1 }
 0x2b2   :  { %v921_v18 = vadd.f32 %v2423_v41, %v2990_v20 }
 0x2b3   :  { %v912_v42 = vpop.f32.mrf.mxu1 }
 0x2b4   :  { %v913_v31 = vadd.f32 %v2990_v20, %v912_v42 }
 0x2b5   :  { %v2424_v43 = vpop.f32.mrf.mxu1 }
 0x2b6   :  { %v924_v14 = vadd.f32 %v2424_v43, %v2990_v20 }
 0x2b7   :  { %v915_v44 = vpop.f32.mrf.mxu1 }
 0x2b8   :  { %v1012_v21 = vpack.c.bf16 %v924_v14, %v921_v18  ;;  %v916_v22 = vadd.f32 %v2990_v20, %v915_v44 }
 0x2ba   :  { %v1011_v35 = vpack.c.bf16 %v916_v22, %v913_v31 }
 0x2c1   :  { %v2427_v45 = vpop.f32.mrf.mxu1 }
 0x2c2   :  { %v937_v3 = vadd.f32 %v2427_v45, %v2990_v20 }
 0x2c3   :  { %v928_v46 = vpop.f32.mrf.mxu1 }
 0x2c4   :  { %v929_v12 = vadd.f32 %v2990_v20, %v928_v46 }
 0x2c5   :  { %v2428_v47 = vpop.f32.mrf.mxu1 }
 0x2c6   :  { %v940_v63 = vadd.f32 %v2428_v47, %v2990_v20 }
 0x2c7   :  { %v931_v48 = vpop.f32.mrf.mxu1 }
 0x2c8   :  { %v1014_v8 = vpack.c.bf16 %v940_v63, %v937_v3  ;;  %v932_v9 = vadd.f32 %v2990_v20, %v931_v48  ;;  %v2575_v63 = vld [vmem:[#allocation2 + $0x1c0] ss:$8 sps:$4 sm:$0xff]  }
 0x2c9   :  { %v2579_v3 = vld [vmem:[#allocation2 + $0x1e0] ss:$8 sps:$4 sm:$0xff]  }
 0x2ca   :  { %v1013_v15 = vpack.c.bf16 %v932_v9, %v929_v12 }
 0x2d1   :  { %v2431_v49 = vpop.f32.mrf.mxu1 }
 0x2d2   :  { %v953_v42 = vadd.f32 %v2431_v49, %v2990_v20  ;;  %v2558_v49 = vld [vmem:[#allocation2 + $0x174] ss:$8 sps:$4 sm:$0xff]  }
 0x2d3   :  { %v944_v50 = vpop.f32.mrf.mxu1 }
 0x2d4   :  { %v945_v48 = vadd.f32 %v2990_v20, %v944_v50  ;;  %v2560_v50 = vld [vmem:[#allocation2 + $0x170] ss:$8 sps:$4 sm:$0xff]  }
 0x2d5   :  { %v2432_v51 = vpop.f32.mrf.mxu1 }
 0x2d6   :  { %v956_v45 = vadd.f32 %v2432_v51, %v2990_v20  ;;  %v2561_v51 = vld [vmem:[#allocation2 + $0x184] ss:$8 sps:$4 sm:$0xff]  }
 0x2d7   :  { %v947_v52 = vpop.f32.mrf.mxu1 }
 0x2d8   :  { %v1016_v46 = vpack.c.bf16 %v956_v45, %v953_v42  ;;  %v948_v47 = vadd.f32 %v2990_v20, %v947_v52  ;;  %v2563_v52 = vld [vmem:[#allocation2 + $0x180] ss:$8 sps:$4 sm:$0xff]  }
 0x2e1   :  { %v2435_v53 = vpop.f32.mrf.mxu1 }
 0x2e2   :  { %v969_v32 = vadd.f32 %v2435_v53, %v2990_v20  ;;  %v1015_v53 = vpack.c.bf16 %v948_v47, %v945_v48 }
 0x2e3   :  { %v960_v54 = vpop.f32.mrf.mxu1 }
 0x2e4   :  { %v961_v43 = vadd.f32 %v2990_v20, %v960_v54  ;;  %v2564_v54 = vld [vmem:[#allocation2 + $0x194] ss:$8 sps:$4 sm:$0xff]  }
 0x2e5   :  { %v2436_v55 = vpop.f32.mrf.mxu1 }
 0x2e6   :  { %v972_v25 = vadd.f32 %v2436_v55, %v2990_v20  ;;  %v2566_v55 = vld [vmem:[#allocation2 + $0x190] ss:$8 sps:$4 sm:$0xff]  }
 0x2e7   :  { %v963_v56 = vpop.f32.mrf.mxu1 }
 0x2e8   :  { %v1018_v36 = vpack.c.bf16 %v972_v25, %v969_v32  ;;  %v964_v41 = vadd.f32 %v2990_v20, %v963_v56  ;;  %v2567_v56 = vld [vmem:[#allocation2 + $0x1a4] ss:$8 sps:$4 sm:$0xff]  }
 0x2ea   :  { %v1017_v44 = vpack.c.bf16 %v964_v41, %v961_v43 }
 0x2f1   :  { %v2439_v57 = vpop.f32.mrf.mxu1 }
 0x2f2   :  { %v985_v13 = vadd.f32 %v2439_v57, %v2990_v20  ;;  %v2585_v57 = vld [vmem:[#allocation2 + $0x240] ss:$8 sps:$4 sm:$0xff]  }
 0x2f3   :  { %v976_v58 = vpop.f32.mrf.mxu1  ;;  %2445 = vmatprep.subr.bf16.mxu0 %v2585_v57 }
 0x2f4   :  { %v977_v19 = vadd.f32 %v2990_v20, %v976_v58  ;;  %v2569_v58 = vld [vmem:[#allocation2 + $0x1a0] ss:$8 sps:$4 sm:$0xff]   ;;  %2446 = vmatpush3.bf16.msra.mxu0 %v2585_v57 }
 0x2f5   :  { %v2440_v59 = vpop.f32.mrf.mxu1 }
 0x2f6   :  { %v988_v10 = vadd.f32 %v2440_v59, %v2990_v20  ;;  %v2570_v59 = vld [vmem:[#allocation2 + $0x1b4] ss:$8 sps:$4 sm:$0xff]  }
 0x2f7   :  { %v979_v60 = vpop.f32.mrf.mxu1 }
 0x2f8   :  { %v1020_v16 = vpack.c.bf16 %v988_v10, %v985_v13  ;;  %v980_v17 = vadd.f32 %v2990_v20, %v979_v60  ;;  %v2586_v60 = vld [vmem:[#allocation2 + $0x230] ss:$8 sps:$4 sm:$0xff]  }
 0x2f9   :  { %2447 = vmatprep.subr.bf16.mxu0 %v2586_v60 }
 0x2fa   :  { %v1019_v30 = vpack.c.bf16 %v980_v17, %v977_v19  ;;  %2448 = vmatpush3.bf16.msra.mxu0 %v2586_v60 }
 0x301   :  { %v2443_v61 = vpop.f32.mrf.mxu1 }
 0x302   :  { %v1001_v1 = vadd.f32 %v2443_v61, %v2990_v20  ;;  %v2572_v61 = vld [vmem:[#allocation2 + $0x1b0] ss:$8 sps:$4 sm:$0xff]  }
 0x303   :  { %v992_v62 = vpop.f32.mrf.mxu1 }
 0x304   :  { %v993_v5 = vadd.f32 %v2990_v20, %v992_v62  ;;  %v2573_v62 = vld [vmem:[#allocation2 + $0x1c4] ss:$8 sps:$4 sm:$0xff]  }
 0x305   :  { %v2444_v0 = vpop.f32.mrf.mxu1 }
 0x306   :  { %v1004_v2 = vadd.f32 %v2444_v0, %v2990_v20  ;;  %v2576_v0 = vld [vmem:[#allocation2 + $0x1d4] ss:$8 sps:$4 sm:$0xff]  }
 0x307   :  { %v995_v4 = vpop.f32.mrf.mxu1 }
 0x308   :  { %v1022_v6 = vpack.c.bf16 %v1004_v2, %v1001_v1  ;;  %v996_v7 = vadd.f32 %v2990_v20, %v995_v4  ;;  %v2545_v20 = vld [vmem:[#allocation2 + $0x120] ss:$8 sps:$4 sm:$0xff]   ;;  %v2578_v1 = vld [vmem:[#allocation2 + $0x1d0] ss:$8 sps:$4 sm:$0xff]   ;;  %v2581_v2 = vld [vmem:[#allocation2 + $0x1e4] ss:$8 sps:$4 sm:$0xff]  }
 0x309   :  { %v2584_v4 = vld [vmem:[#allocation2 + $0x1f4] ss:$8 sps:$4 sm:$0xff]  }
 0x30a   :  { %v1021_v11 = vpack.c.bf16 %v996_v7, %v993_v5  ;;  %2245 = vmatprep.subr.bf16.mxu1 %v1022_v6  ;;  %v2582_v5 = vld [vmem:[#allocation2 + $0x1f0] ss:$8 sps:$4 sm:$0xff]  }
 0x30b   :  { %2246 = vmatpush3.bf16.msra.mxu1 %v1014_v8 }
 0x30c   :  { %2247 = vmatprep.subr.bf16.mxu1 %v1021_v11 }
 0x30f   :  { %2248 = vmatpush3.bf16.msra.mxu1 %v1013_v15 }
 0x310   :  { %2249 = vmatprep.subr.bf16.mxu1 %v1020_v16 }
 0x313   :  { %2250 = vmatpush3.bf16.msra.mxu1 %v1012_v21 }
 0x314   :  { %2251 = vmatprep.subr.bf16.mxu1 %v1019_v30 }
 0x317   :  { %2252 = vmatpush3.bf16.msra.mxu1 %v1011_v35 }
 0x318   :  { %2253 = vmatprep.subr.bf16.mxu1 %v1018_v36 }
 0x31b   :  { %2254 = vmatpush3.bf16.msra.mxu1 %v1010_v38  ;;  %v2542_v38 = vld [vmem:[#allocation2 + $0x110] ss:$8 sps:$4 sm:$0xff]  }
 0x31c   :  { %2255 = vmatprep.subr.bf16.mxu1 %v1017_v44 }
 0x31f   :  { %2256 = vmatpush3.bf16.msra.mxu1 %v1009_v40  ;;  %v2548_v40 = vld [vmem:[#allocation2 + $0x130] ss:$8 sps:$4 sm:$0xff]  }
 0x320   :  { %2257 = vmatprep.subr.bf16.mxu1 %v1016_v46 }
 0x323   :  { %2258 = vmatpush3.bf16.msra.mxu1 %v1008_v27  ;;  %v2552_v27 = vld [vmem:[#allocation2 + $0x154] ss:$8 sps:$4 sm:$0xff]  }
 0x324   :  { %2259 = vmatprep.subr.bf16.mxu1 %v1015_v53 }
 0x327   :  { %2260 = vmatpush3.bf16.msra.mxu1 %v1007_v29  ;;  %v2557_v29 = vld [vmem:[#allocation2 + $0x160] ss:$8 sps:$4 sm:$0xff]  }
 0x32a   :  { %1216 = vmatmul.mubr.bf16.vlgmr.msra.gmra.mxu1 %v2537_v33 }
 0x32b   :  { %1223 = vmatprep.mubr.bf16.mxu1 %v2540_v34 }
 0x332   :  { %1224 = vmatmul.mubr.bf16.gmra.mxu1 %v2542_v38 }
 0x333   :  { %1231 = vmatprep.mubr.bf16.mxu1 %v2543_v37 }
 0x33a   :  { %1232 = vmatmul.mubr.bf16.gmra.mxu1 %v2545_v20 }
 0x33b   :  { %1239 = vmatprep.mubr.bf16.mxu1 %v2546_v39 }
 0x342   :  { %1240 = vmatmul.mubr.bf16.gmra.mxu1 %v2548_v40 }
 0x343   :  { %1247 = vmatprep.mubr.bf16.mxu1 %v2549_v23 }
 0x34a   :  { %1248 = vmatmul.mubr.bf16.gmra.mxu1 %v2551_v24 }
 0x34b   :  { %1255 = vmatprep.mubr.bf16.mxu1 %v2552_v27 }
 0x352   :  { %1256 = vmatmul.mubr.bf16.gmra.mxu1 %v2554_v26 }
 0x353   :  { %1263 = vmatprep.mubr.bf16.mxu1 %v2555_v28 }
 0x35a   :  { %1264 = vmatmul.mubr.bf16.gmra.mxu1 %v2557_v29 }
 0x35b   :  { %1271 = vmatprep.mubr.bf16.mxu1 %v2558_v49 }
 0x362   :  { %1272 = vmatmul.mubr.bf16.gmra.mxu1 %v2560_v50 }
 0x363   :  { %1279 = vmatprep.mubr.bf16.mxu1 %v2561_v51 }
 0x36a   :  { %1280 = vmatmul.mubr.bf16.gmra.mxu1 %v2563_v52 }
 0x36b   :  { %1287 = vmatprep.mubr.bf16.mxu1 %v2564_v54 }
 0x372   :  { %1288 = vmatmul.mubr.bf16.gmra.mxu1 %v2566_v55 }
 0x373   :  { %1295 = vmatprep.mubr.bf16.mxu1 %v2567_v56 }
 0x37a   :  { %1296 = vmatmul.mubr.bf16.gmra.mxu1 %v2569_v58 }
 0x37b   :  { %1303 = vmatprep.mubr.bf16.mxu1 %v2570_v59 }
 0x382   :  { %1304 = vmatmul.mubr.bf16.gmra.mxu1 %v2572_v61 }
 0x383   :  { %1311 = vmatprep.mubr.bf16.mxu1 %v2573_v62 }
 0x38a   :  { %1312 = vmatmul.mubr.bf16.gmra.mxu1 %v2575_v63 }
 0x38b   :  { %1319 = vmatprep.mubr.bf16.mxu1 %v2576_v0 }
 0x392   :  { %1320 = vmatmul.mubr.bf16.gmra.mxu1 %v2578_v1 }
 0x393   :  { %1327 = vmatprep.mubr.bf16.mxu1 %v2581_v2 }
 0x39a   :  { %1328 = vmatmul.mubr.bf16.gmra.mxu1 %v2579_v3 }
 0x39b   :  { %1335 = vmatprep.mubr.bf16.mxu1 %v2584_v4 }
 0x3a2   :  { %1336 = vmatmul.mubr.bf16.gmra.mxu1 %v2582_v5 }
 0x3ea   :  { %v2261_v6 = vpop.f32.mrf.mxu1 }
 0x3ec   :  { %v2262_v7 = vpop.f32.mrf.mxu1 }
 0x3ed   :  { %v2263_v9 = vadd.f32 %v2262_v7, %v2261_v6 }
 0x3ee   :  { %v2264_v8 = vpop.f32.mrf.mxu1 }
 0x3ef   :  { %v1344_v13 = vmax.f32 %v2263_v9, 0.0 }
 0x3f0   :  { %v2265_v10 = vpop.f32.mrf.mxu1 }
 0x3f1   :  { %v2266_v11 = vadd.f32 %v2265_v10, %v2264_v8 }
 0x3f2   :  { %v2267_v12 = vpop.f32.mrf.mxu1 }
 0x3f3   :  { %v1345_v14 = vmax.f32 %v2266_v11, 0.0 }
 0x3f4   :  { %v2268_v15 = vpop.f32.mrf.mxu1 }
 0x3f5   :  { %v1381_v16 = vpack.c.bf16 %v1345_v14, %v1344_v13  ;;  %v2269_v18 = vadd.f32 %v2268_v15, %v2267_v12 }
 0x3f6   :  { %v2270_v17 = vpop.f32.mrf.mxu1 }
 0x3f7   :  { %2449 = vmatprep.mubr.msk.bf16.mxu0 %vm797_vm1, %v1381_v16  ;;  %v1346_v25 = vmax.f32 %v2269_v18, 0.0 }
 0x3f8   :  { %v2271_v19 = vpop.f32.mrf.mxu1 }
 0x3f9   :  { %v2272_v21 = vadd.f32 %v2271_v19, %v2270_v17 }
 0x3fa   :  { %v2273_v22 = vpop.f32.mrf.mxu1 }
 0x3fb   :  { %v1347_v30 = vmax.f32 %v2272_v21, 0.0 }
 0x3fc   :  { %v2274_v31 = vpop.f32.mrf.mxu1 }
 0x3fd   :  { %v1382_v32 = vpack.c.bf16 %v1347_v30, %v1346_v25  ;;  %v2275_v36 = vadd.f32 %v2274_v31, %v2273_v22 }
 0x3fe   :  { %v2276_v35 = vpop.f32.mrf.mxu1 }
 0x3ff   :  { %2450 = vmatmul.mubr.msk.bf16.vlgmr.msra.gmra.mxu0 %vm797_vm1, %v1382_v32  ;;  %v1348_v44 = vmax.f32 %v2275_v36, 0.0 }
 0x400   :  { %v2277_v41 = vpop.f32.mrf.mxu1 }
 0x401   :  { %v2278_v43 = vadd.f32 %v2277_v41, %v2276_v35 }
 0x402   :  { %v2279_v45 = vpop.f32.mrf.mxu1 }
 0x403   :  { %v1349_v42 = vmax.f32 %v2278_v43, 0.0 }
 0x404   :  { %v2280_v46 = vpop.f32.mrf.mxu1 }
 0x405   :  { %v1383_v47 = vpack.c.bf16 %v1349_v42, %v1348_v44  ;;  %v2281_v53 = vadd.f32 %v2280_v46, %v2279_v45 }
 0x406   :  { %v2282_v48 = vpop.f32.mrf.mxu1 }
 0x407   :  { %2453 = vmatprep.mubr.msk.bf16.mxu0 %vm797_vm1, %v1383_v47  ;;  %v1350_v37 = vmax.f32 %v2281_v53, 0.0 }
 0x408   :  { %v2283_v33 = vpop.f32.mrf.mxu1 }
 0x409   :  { %v2284_v34 = vadd.f32 %v2283_v33, %v2282_v48 }
 0x40a   :  { %v2285_v38 = vpop.f32.mrf.mxu1 }
 0x40b   :  { %v1351_v20 = vmax.f32 %v2284_v34, 0.0 }
 0x40c   :  { %v2286_v39 = vpop.f32.mrf.mxu1 }
 0x40d   :  { %v1384_v40 = vpack.c.bf16 %v1351_v20, %v1350_v37  ;;  %v2287_v24 = vadd.f32 %v2286_v39, %v2285_v38 }
 0x40e   :  { %v2288_v23 = vpop.f32.mrf.mxu1 }
 0x40f   :  { %2454 = vmatmul.mubr.msk.bf16.gmra.mxu0 %vm797_vm1, %v1384_v40  ;;  %v1352_v29 = vmax.f32 %v2287_v24, 0.0 }
 0x410   :  { %v2289_v27 = vpop.f32.mrf.mxu1 }
 0x411   :  { %v2290_v26 = vadd.f32 %v2289_v27, %v2288_v23 }
 0x412   :  { %v2291_v28 = vpop.f32.mrf.mxu1 }
 0x413   :  { %v1353_v49 = vmax.f32 %v2290_v26, 0.0 }
 0x414   :  { %v2292_v50 = vpop.f32.mrf.mxu1 }
 0x415   :  { %v1385_v51 = vpack.c.bf16 %v1353_v49, %v1352_v29  ;;  %v2293_v54 = vadd.f32 %v2292_v50, %v2291_v28 }
 0x416   :  { %v2294_v52 = vpop.f32.mrf.mxu1 }
 0x417   :  { %2457 = vmatprep.mubr.msk.bf16.mxu0 %vm797_vm1, %v1385_v51  ;;  %v1354_v58 = vmax.f32 %v2293_v54, 0.0 }
 0x418   :  { %v2295_v55 = vpop.f32.mrf.mxu1 }
 0x419   :  { %v2296_v56 = vadd.f32 %v2295_v55, %v2294_v52 }
 0x41a   :  { %v2297_v57 = vpop.f32.mrf.mxu1 }
 0x41b   :  { %v1355_v59 = vmax.f32 %v2296_v56, 0.0 }
 0x41c   :  { %v2298_v60 = vpop.f32.mrf.mxu1 }
 0x41d   :  { %v1386_v61 = vpack.c.bf16 %v1355_v59, %v1354_v58  ;;  %v2299_v63 = vadd.f32 %v2298_v60, %v2297_v57 }
 0x41e   :  { %v2300_v62 = vpop.f32.mrf.mxu1 }
 0x41f   :  { %2458 = vmatmul.mubr.msk.bf16.gmra.mxu0 %vm797_vm1, %v1386_v61  ;;  %v1356_v3 = vmax.f32 %v2299_v63, 0.0 }
 0x420   :  { %v2301_v0 = vpop.f32.mrf.mxu1 }
 0x421   :  { %v2302_v1 = vadd.f32 %v2301_v0, %v2300_v62 }
 0x422   :  { %v2303_v2 = vpop.f32.mrf.mxu1 }
 0x423   :  { %v1357_v4 = vmax.f32 %v2302_v1, 0.0 }
 0x424   :  { %v2304_v5 = vpop.f32.mrf.mxu1 }
 0x425   :  { %v1387_v6 = vpack.c.bf16 %v1357_v4, %v1356_v3  ;;  %v2305_v8 = vadd.f32 %v2304_v5, %v2303_v2 }
 0x426   :  { %v2306_v7 = vpop.f32.mrf.mxu1 }
 0x427   :  { %2461 = vmatprep.mubr.msk.bf16.mxu0 %vm797_vm1, %v1387_v6  ;;  %v1358_v12 = vmax.f32 %v2305_v8, 0.0 }
 0x428   :  { %v2307_v9 = vpop.f32.mrf.mxu1 }
 0x429   :  { %v2308_v10 = vadd.f32 %v2307_v9, %v2306_v7 }
 0x42a   :  { %v2309_v11 = vpop.f32.mrf.mxu1 }
 0x42b   :  { %v1359_v13 = vmax.f32 %v2308_v10, 0.0 }
 0x42c   :  { %v2310_v14 = vpop.f32.mrf.mxu1 }
 0x42d   :  { %v1388_v15 = vpack.c.bf16 %v1359_v13, %v1358_v12  ;;  %v2311_v17 = vadd.f32 %v2310_v14, %v2309_v11 }
 0x42e   :  { %v2312_v16 = vpop.f32.mrf.mxu1 }
 0x42f   :  { %2462 = vmatmul.mubr.msk.bf16.gmra.mxu0 %vm797_vm1, %v1388_v15  ;;  %v1360_v22 = vmax.f32 %v2311_v17, 0.0 }
 0x430   :  { %v2313_v18 = vpop.f32.mrf.mxu1 }
 0x431   :  { %v2314_v19 = vadd.f32 %v2313_v18, %v2312_v16 }
 0x432   :  { %v2315_v21 = vpop.f32.mrf.mxu1 }
 0x433   :  { %v1361_v25 = vmax.f32 %v2314_v19, 0.0 }
 0x434   :  { %v2316_v30 = vpop.f32.mrf.mxu1 }
 0x435   :  { %v1389_v31 = vpack.c.bf16 %v1361_v25, %v1360_v22  ;;  %v2317_v35 = vadd.f32 %v2316_v30, %v2315_v21  ;;  %v3079_v25 = vld [vmem:[%s3467_s2 + $0x1] ss:$0 sm:$0xff] }
 0x436   :  { %v2318_v32 = vpop.f32.mrf.mxu1 }
 0x437   :  { %2465 = vmatprep.mubr.msk.bf16.mxu0 %vm797_vm1, %v1389_v31  ;;  %v1362_v45 = vmax.f32 %v2317_v35, 0.0 }
 0x438   :  { %v2319_v36 = vpop.f32.mrf.mxu1 }
 0x439   :  { %v2320_v41 = vadd.f32 %v2319_v36, %v2318_v32 }
 0x43a   :  { %v2321_v43 = vpop.f32.mrf.mxu1 }
 0x43b   :  { %v1363_v44 = vmax.f32 %v2320_v41, 0.0 }
 0x43c   :  { %v2322_v42 = vpop.f32.mrf.mxu1 }
 0x43d   :  { %v1390_v46 = vpack.c.bf16 %v1363_v44, %v1362_v45  ;;  %v2323_v48 = vadd.f32 %v2322_v42, %v2321_v43 }
 0x43e   :  { %v2324_v47 = vpop.f32.mrf.mxu1 }
 0x43f   :  { %2466 = vmatmul.mubr.msk.bf16.gmra.mxu0 %vm797_vm1, %v1390_v46  ;;  %v1364_v38 = vmax.f32 %v2323_v48, 0.0 }
 0x440   :  { %v2325_v53 = vpop.f32.mrf.mxu1 }
 0x441   :  { %v2326_v33 = vadd.f32 %v2325_v53, %v2324_v47 }
 0x442   :  { %v2327_v34 = vpop.f32.mrf.mxu1 }
 0x443   :  { %v1365_v37 = vmax.f32 %v2326_v33, 0.0 }
 0x444   :  { %v2328_v20 = vpop.f32.mrf.mxu1 }
 0x445   :  { %v1391_v39 = vpack.c.bf16 %v1365_v37, %v1364_v38  ;;  %v2329_v23 = vadd.f32 %v2328_v20, %v2327_v34 }
 0x446   :  { %v2330_v40 = vpop.f32.mrf.mxu1 }
 0x447   :  { %2469 = vmatprep.mubr.msk.bf16.mxu0 %vm797_vm1, %v1391_v39  ;;  %v1366_v28 = vmax.f32 %v2329_v23, 0.0 }
 0x448   :  { %v2331_v24 = vpop.f32.mrf.mxu1 }
 0x449   :  { %v2332_v27 = vadd.f32 %v2331_v24, %v2330_v40 }
 0x44a   :  { %v2333_v26 = vpop.f32.mrf.mxu1 }
 0x44b   :  { %v1367_v29 = vmax.f32 %v2332_v27, 0.0 }
 0x44c   :  { %v2334_v49 = vpop.f32.mrf.mxu1 }
 0x44d   :  { %v1392_v50 = vpack.c.bf16 %v1367_v29, %v1366_v28  ;;  %v2335_v52 = vadd.f32 %v2334_v49, %v2333_v26 }
 0x44e   :  { %v2336_v51 = vpop.f32.mrf.mxu1 }
 0x44f   :  { %2470 = vmatmul.mubr.msk.bf16.gmra.mxu0 %vm797_vm1, %v1392_v50  ;;  %v1368_v57 = vmax.f32 %v2335_v52, 0.0 }
 0x450   :  { %v2337_v54 = vpop.f32.mrf.mxu1 }
 0x451   :  { %v2338_v55 = vadd.f32 %v2337_v54, %v2336_v51 }
 0x452   :  { %v2339_v56 = vpop.f32.mrf.mxu1 }
 0x453   :  { %v1369_v58 = vmax.f32 %v2338_v55, 0.0 }
 0x454   :  { %v2340_v59 = vpop.f32.mrf.mxu1 }
 0x455   :  { %v1393_v60 = vpack.c.bf16 %v1369_v58, %v1368_v57  ;;  %v2341_v62 = vadd.f32 %v2340_v59, %v2339_v56 }
 0x456   :  { %v2342_v61 = vpop.f32.mrf.mxu1 }
 0x457   :  { %2473 = vmatprep.mubr.msk.bf16.mxu0 %vm797_vm1, %v1393_v60  ;;  %v1370_v2 = vmax.f32 %v2341_v62, 0.0 }
 0x458   :  { %v2343_v63 = vpop.f32.mrf.mxu1 }
 0x459   :  { %v2344_v0 = vadd.f32 %v2343_v63, %v2342_v61 }
 0x45a   :  { %v2345_v1 = vpop.f32.mrf.mxu1 }
 0x45b   :  { %v1371_v3 = vmax.f32 %v2344_v0, 0.0 }
 0x45c   :  { %v2346_v4 = vpop.f32.mrf.mxu1 }
 0x45d   :  { %v1394_v5 = vpack.c.bf16 %v1371_v3, %v1370_v2  ;;  %v2347_v7 = vadd.f32 %v2346_v4, %v2345_v1 }
 0x45e   :  { %v2348_v6 = vpop.f32.mrf.mxu1 }
 0x45f   :  { %2474 = vmatmul.mubr.msk.bf16.gmra.mxu0 %vm797_vm1, %v1394_v5  ;;  %v1372_v11 = vmax.f32 %v2347_v7, 0.0 }
 0x460   :  { %v2349_v8 = vpop.f32.mrf.mxu1 }
 0x461   :  { %v2350_v9 = vadd.f32 %v2349_v8, %v2348_v6 }
 0x462   :  { %v2351_v10 = vpop.f32.mrf.mxu1 }
 0x463   :  { %v1373_v12 = vmax.f32 %v2350_v9, 0.0 }
 0x464   :  { %v2352_v13 = vpop.f32.mrf.mxu1 }
 0x465   :  { %v1395_v14 = vpack.c.bf16 %v1373_v12, %v1372_v11  ;;  %v2353_v16 = vadd.f32 %v2352_v13, %v2351_v10 }
 0x466   :  { %v2354_v15 = vpop.f32.mrf.mxu1 }
 0x467   :  { %2477 = vmatprep.mubr.msk.bf16.mxu0 %vm797_vm1, %v1395_v14  ;;  %v1374_v19 = vmax.f32 %v2353_v16, 0.0 }
 0x468   :  { %v2355_v17 = vpop.f32.mrf.mxu1 }
 0x469   :  { %v2356_v18 = vadd.f32 %v2355_v17, %v2354_v15 }
 0x46b   :  { %v1375_v21 = vmax.f32 %v2356_v18, 0.0 }
 0x46d   :  { %v1396_v22 = vpack.c.bf16 %v1375_v21, %v1374_v19 }
 0x46f   :  { %2478 = vmatmul.mubr.msk.bf16.gmra.mxu0 %vm797_vm1, %v1396_v22 }
 0x4bf   :  { %v2451_v30 = vpop.f32.mrf.mxu0 }
 0x4c0   :  { %v3082_v31 = vadd.f32 %v2451_v30, %v3079_v25 }
 0x4c1   :  { %v1495_v32 = vpop.f32.mrf.mxu0 }
 0x4c2   :  { %v3085_v35 = vadd.f32 %v3079_v25, %v1495_v32  ;;  %1626 = vmax.xlane.f32.xlu1 %v3082_v31 }
 0x4c3   :  { %v2452_v36 = vpop.f32.mrf.mxu0 }
 0x4c4   :  { %v3089_v41 = vadd.f32 %v2452_v36, %v3079_v25  ;;  %1622 = vmax.xlane.f32.xlu0 %v3085_v35 }
 0x4c5   :  { %v1498_v43 = vpop.f32.mrf.mxu0 }
 0x4c6   :  { %v3093_v45 = vadd.f32 %v3079_v25, %v1498_v43  ;;  %1628 = vmax.xlane.f32.xlu1 %v3089_v41 }
 0x4c8   :  { %1624 = vmax.xlane.f32.xlu0 %v3093_v45 }
 0x4cf   :  { %v2455_v44 = vpop.f32.mrf.mxu0 }
 0x4d0   :  { %v3098_v42 = vadd.f32 %v2455_v44, %v3079_v25 }
 0x4d1   :  { %v1511_v46 = vpop.f32.mrf.mxu0 }
 0x4d2   :  { %1634 = vmax.xlane.f32.xlu0 %v3098_v42  ;;  %v3102_v48 = vadd.f32 %v3079_v25, %v1511_v46 }
 0x4d3   :  { %v2456_v47 = vpop.f32.mrf.mxu0 }
 0x4d4   :  { %v3105_v53 = vadd.f32 %v2456_v47, %v3079_v25 }
 0x4d5   :  { %v1514_v33 = vpop.f32.mrf.mxu0 }
 0x4d6   :  { %1636 = vmax.xlane.f32.xlu1 %v3105_v53  ;;  %1630 = vmax.xlane.f32.xlu0 %v3102_v48  ;;  %v3110_v34 = vadd.f32 %v3079_v25, %v1514_v33 }
 0x4da   :  { %1632 = vmax.xlane.f32.xlu1 %v3110_v34 }
 0x4df   :  { %v2459_v38 = vpop.f32.mrf.mxu0 }
 0x4e0   :  { %v3114_v37 = vadd.f32 %v2459_v38, %v3079_v25 }
 0x4e1   :  { %v1527_v20 = vpop.f32.mrf.mxu0 }
 0x4e2   :  { %1642 = vmax.xlane.f32.xlu0 %v3114_v37  ;;  %v3118_v40 = vadd.f32 %v3079_v25, %v1527_v20 }
 0x4e3   :  { %v2460_v39 = vpop.f32.mrf.mxu0 }
 0x4e4   :  { %v3121_v23 = vadd.f32 %v2460_v39, %v3079_v25 }
 0x4e5   :  { %v1530_v24 = vpop.f32.mrf.mxu0 }
 0x4e6   :  { %1644 = vmax.xlane.f32.xlu1 %v3121_v23  ;;  %1638 = vmax.xlane.f32.xlu0 %v3118_v40  ;;  %v3126_v27 = vadd.f32 %v3079_v25, %v1530_v24 }
 0x4ea   :  { %1640 = vmax.xlane.f32.xlu1 %v3126_v27 }
 0x4ef   :  { %v2463_v26 = vpop.f32.mrf.mxu0 }
 0x4f0   :  { %v3130_v28 = vadd.f32 %v2463_v26, %v3079_v25 }
 0x4f1   :  { %v1543_v29 = vpop.f32.mrf.mxu0 }
 0x4f2   :  { %1650 = vmax.xlane.f32.xlu0 %v3130_v28  ;;  %v3134_v50 = vadd.f32 %v3079_v25, %v1543_v29 }
 0x4f3   :  { %v2464_v49 = vpop.f32.mrf.mxu0 }
 0x4f4   :  { %v3137_v51 = vadd.f32 %v2464_v49, %v3079_v25 }
 0x4f5   :  { %v1546_v52 = vpop.f32.mrf.mxu0 }
 0x4f6   :  { %1652 = vmax.xlane.f32.xlu1 %v3137_v51  ;;  %1646 = vmax.xlane.f32.xlu0 %v3134_v50  ;;  %v3142_v54 = vadd.f32 %v3079_v25, %v1546_v52 }
 0x4fa   :  { %1648 = vmax.xlane.f32.xlu1 %v3142_v54 }
 0x4ff   :  { %v2467_v55 = vpop.f32.mrf.mxu0 }
 0x500   :  { %v3146_v56 = vadd.f32 %v2467_v55, %v3079_v25 }
 0x501   :  { %v1559_v57 = vpop.f32.mrf.mxu0 }
 0x502   :  { %1658 = vmax.xlane.f32.xlu0 %v3146_v56  ;;  %v3150_v59 = vadd.f32 %v3079_v25, %v1559_v57 }
 0x503   :  { %v2468_v58 = vpop.f32.mrf.mxu0 }
 0x504   :  { %v3153_v60 = vadd.f32 %v2468_v58, %v3079_v25 }
 0x505   :  { %v1562_v61 = vpop.f32.mrf.mxu0 }
 0x506   :  { %1660 = vmax.xlane.f32.xlu1 %v3153_v60  ;;  %1654 = vmax.xlane.f32.xlu0 %v3150_v59  ;;  %v3158_v62 = vadd.f32 %v3079_v25, %v1562_v61 }
 0x50a   :  { %1656 = vmax.xlane.f32.xlu1 %v3158_v62 }
 0x50f   :  { %v2471_v63 = vpop.f32.mrf.mxu0 }
 0x510   :  { %v3162_v0 = vadd.f32 %v2471_v63, %v3079_v25 }
 0x511   :  { %v1575_v1 = vpop.f32.mrf.mxu0 }
 0x512   :  { %1666 = vmax.xlane.f32.xlu0 %v3162_v0  ;;  %v3166_v3 = vadd.f32 %v3079_v25, %v1575_v1 }
 0x513   :  { %v2472_v2 = vpop.f32.mrf.mxu0 }
 0x514   :  { %v3169_v4 = vadd.f32 %v2472_v2, %v3079_v25 }
 0x515   :  { %v1578_v5 = vpop.f32.mrf.mxu0 }
 0x516   :  { %1668 = vmax.xlane.f32.xlu1 %v3169_v4  ;;  %1662 = vmax.xlane.f32.xlu0 %v3166_v3  ;;  %v3174_v6 = vadd.f32 %v3079_v25, %v1578_v5 }
 0x51a   :  { %1664 = vmax.xlane.f32.xlu1 %v3174_v6 }
 0x51f   :  { %v2475_v7 = vpop.f32.mrf.mxu0 }
 0x520   :  { %v3178_v8 = vadd.f32 %v2475_v7, %v3079_v25 }
 0x521   :  { %v1591_v9 = vpop.f32.mrf.mxu0 }
 0x522   :  { %1674 = vmax.xlane.f32.xlu0 %v3178_v8  ;;  %v3182_v11 = vadd.f32 %v3079_v25, %v1591_v9 }
 0x523   :  { %v2476_v10 = vpop.f32.mrf.mxu0 }
 0x524   :  { %v3185_v12 = vadd.f32 %v2476_v10, %v3079_v25 }
 0x525   :  { %v1594_v13 = vpop.f32.mrf.mxu0 }
 0x526   :  { %1676 = vmax.xlane.f32.xlu1 %v3185_v12  ;;  %1670 = vmax.xlane.f32.xlu0 %v3182_v11  ;;  %v3190_v14 = vadd.f32 %v3079_v25, %v1594_v13 }
 0x52a   :  { %1672 = vmax.xlane.f32.xlu1 %v3190_v14 }
 0x52f   :  { %v2479_v15 = vpop.f32.mrf.mxu0 }
 0x530   :  { %v3198_v21 = vadd.f32 %v2479_v15, %v3079_v25 }
 0x531   :  { %v1607_v16 = vpop.f32.mrf.mxu0 }
 0x532   :  { %v3194_v17 = vadd.f32 %v3079_v25, %v1607_v16 }
 0x533   :  { %v2480_v18 = vpop.f32.mrf.mxu0 }
 0x534   :  { %1678 = vmax.xlane.f32.xlu0 %v3194_v17  ;;  %v3206_v30 = vadd.f32 %v2480_v18, %v3079_v25 }
 0x535   :  { %v1610_v19 = vpop.f32.mrf.mxu0 }
 0x536   :  { %v3201_v22 = vadd.f32 %v3079_v25, %v1610_v19 }
 0x538   :  { %1680 = vmax.xlane.f32.xlu1 %v3201_v22  ;;  %1682 = vmax.xlane.f32.xlu0 %v3198_v21 }
 0x53c   :  { %1684 = vmax.xlane.f32.xlu1 %v3206_v30 }
 0x54b   :  { %v1627_v32 = vpop.xlane.xlu1 %1626 }
 0x54c   :  { %v3210_v36 = vsub.f32 %v3082_v31, %v1627_v32 }
 0x54d   :  { %v1623_v43 = vpop.xlane.xlu0 %1622 }
 0x54e   :  { %v1722_v44 = vmul.f32 1.442695, %v3210_v36  ;;  %v3214_v46 = vsub.f32 %v3085_v35, %v1623_v43 }
 0x54f   :  { %v1629_v47 = vpop.xlane.xlu1 %1628 }
 0x550   :  { %2587 = vpow2.f32 %v1722_v44  ;;  %v1718_v33 = vmul.f32 1.442695, %v3214_v46  ;;  %v3218_v38 = vsub.f32 %v3089_v41, %v1629_v47 }
 0x551   :  { %v1625_v25 = vpop.xlane.xlu0 %1624 }
 0x552   :  { %v1724_v20 = vmul.f32 1.442695, %v3218_v38  ;;  %v3222_v39 = vsub.f32 %v3093_v45, %v1625_v25  ;;  %2589 = vpow2.f32 %v1718_v33 }
 0x554   :  { %2591 = vpow2.f32 %v1724_v20  ;;  %v1720_v31 = vmul.f32 1.442695, %v3222_v39 }
 0x556   :  { %2593 = vpow2.f32 %v1720_v31 }
 0x55b   :  { %v1635_v35 = vpop.xlane.xlu0 %1634 }
 0x55c   :  { %v3226_v24 = vsub.f32 %v3098_v42, %v1635_v35 }
 0x55d   :  { %v2588_v26 = vpop.eup %2587 }
 0x55e   :  { %v1730_v29 = vmul.f32 1.442695, %v3226_v24  ;;  %1786 = vadd.xlane.f32.xlu0 %v2588_v26 }
 0x55f   :  { %v1637_v41 = vpop.xlane.xlu1 %1636  ;;  %v1631_v49 = vpop.xlane.xlu0 %1630 }
 0x560   :  { %v2590_v52 = vpop.eup %2589  ;;  %2595 = vpow2.f32 %v1730_v29  ;;  %v3230_v45 = vsub.f32 %v3105_v53, %v1637_v41  ;;  %v3233_v55 = vsub.f32 %v3102_v48, %v1631_v49 }
 0x561   :  { %v2592_v57 = vpop.eup %2591 }
 0x562   :  { %v1732_v58 = vmul.f32 1.442695, %v3230_v45  ;;  %v1726_v42 = vmul.f32 1.442695, %v3233_v55  ;;  %1788 = vadd.xlane.f32.xlu1 %v2592_v57  ;;  %1782 = vadd.xlane.f32.xlu0 %v2590_v52 }
 0x563   :  { %v1633_v61 = vpop.xlane.xlu1 %1632  ;;  %v2594_v1 = vpop.eup %2593 }
 0x564   :  { %2597 = vpow2.f32 %v1732_v58  ;;  %v3238_v63 = vsub.f32 %v3110_v34, %v1633_v61 }
 0x565   :  { %2599 = vpow2.f32 %v1726_v42 }
 0x566   :  { %v1728_v53 = vmul.f32 1.442695, %v3238_v63  ;;  %1784 = vadd.xlane.f32.xlu1 %v2594_v1 }
 0x568   :  { %2601 = vpow2.f32 %v1728_v53 }
 0x56b   :  { %v1643_v48 = vpop.xlane.xlu0 %1642 }
 0x56c   :  { %v3242_v2 = vsub.f32 %v3114_v37, %v1643_v48 }
 0x56d   :  { %v2596_v5 = vpop.eup %2595 }
 0x56e   :  { %v1738_v7 = vmul.f32 1.442695, %v3242_v2  ;;  %1794 = vadd.xlane.f32.xlu0 %v2596_v5 }
 0x56f   :  { %v1645_v9 = vpop.xlane.xlu1 %1644  ;;  %v1639_v10 = vpop.xlane.xlu0 %1638 }
 0x570   :  { %2603 = vpow2.f32 %v1738_v7  ;;  %v3246_v34 = vsub.f32 %v3121_v23, %v1645_v9  ;;  %v3249_v13 = vsub.f32 %v3118_v40, %v1639_v10 }
 0x571   :  { %v2598_v15 = vpop.eup %2597 }
 0x572   :  { %v2600_v16 = vpop.eup %2599  ;;  %v1740_v18 = vmul.f32 1.442695, %v3246_v34  ;;  %v1734_v37 = vmul.f32 1.442695, %v3249_v13  ;;  %1796 = vadd.xlane.f32.xlu1 %v2598_v15 }
 0x573   :  { %1790 = vadd.xlane.f32.xlu0 %v2600_v16  ;;  %v1641_v19 = vpop.xlane.xlu1 %1640 }
 0x574   :  { %2605 = vpow2.f32 %v1740_v18  ;;  %v3254_v32 = vsub.f32 %v3126_v27, %v1641_v19 }
 0x575   :  { %v2602_v43 = vpop.eup %2601  ;;  %2607 = vpow2.f32 %v1734_v37 }
 0x576   :  { %v1736_v23 = vmul.f32 1.442695, %v3254_v32  ;;  %1792 = vadd.xlane.f32.xlu1 %v2602_v43 }
 0x578   :  { %2609 = vpow2.f32 %v1736_v23 }
 0x57b   :  { %v1651_v40 = vpop.xlane.xlu0 %1650 }
 0x57c   :  { %v3258_v44 = vsub.f32 %v3130_v28, %v1651_v40 }
 0x57d   :  { %v2604_v47 = vpop.eup %2603 }
 0x57e   :  { %v1746_v33 = vmul.f32 1.442695, %v3258_v44  ;;  %1802 = vadd.xlane.f32.xlu0 %v2604_v47 }
 0x57f   :  { %v1653_v25 = vpop.xlane.xlu1 %1652  ;;  %v1647_v20 = vpop.xlane.xlu0 %1646 }
 0x580   :  { %2611 = vpow2.f32 %v1746_v33  ;;  %v3262_v27 = vsub.f32 %v3137_v51, %v1653_v25  ;;  %v3265_v31 = vsub.f32 %v3134_v50, %v1647_v20 }
 0x581   :  { %v2606_v35 = vpop.eup %2605 }
 0x582   :  { %v2608_v26 = vpop.eup %2607  ;;  %v1748_v29 = vmul.f32 1.442695, %v3262_v27  ;;  %v1742_v28 = vmul.f32 1.442695, %v3265_v31  ;;  %1804 = vadd.xlane.f32.xlu1 %v2606_v35 }
 0x583   :  { %1798 = vadd.xlane.f32.xlu0 %v2608_v26  ;;  %v1649_v41 = vpop.xlane.xlu1 %1648 }
 0x584   :  { %2613 = vpow2.f32 %v1748_v29  ;;  %v3270_v49 = vsub.f32 %v3142_v54, %v1649_v41 }
 0x585   :  { %v2610_v52 = vpop.eup %2609  ;;  %2615 = vpow2.f32 %v1742_v28 }
 0x586   :  { %v1744_v51 = vmul.f32 1.442695, %v3270_v49  ;;  %1800 = vadd.xlane.f32.xlu1 %v2610_v52 }
 0x588   :  { %2617 = vpow2.f32 %v1744_v51 }
 0x58b   :  { %v1659_v50 = vpop.xlane.xlu0 %1658 }
 0x58c   :  { %v3274_v57 = vsub.f32 %v3146_v56, %v1659_v50 }
 0x58d   :  { %v2612_v58 = vpop.eup %2611 }
 0x58e   :  { %v1754_v42 = vmul.f32 1.442695, %v3274_v57  ;;  %1810 = vadd.xlane.f32.xlu0 %v2612_v58 }
 0x58f   :  { %v1661_v61 = vpop.xlane.xlu1 %1660  ;;  %v1655_v1 = vpop.xlane.xlu0 %1654 }
 0x590   :  { %2619 = vpow2.f32 %v1754_v42  ;;  %v3278_v54 = vsub.f32 %v3153_v60, %v1661_v61  ;;  %v3281_v53 = vsub.f32 %v3150_v59, %v1655_v1 }
 0x591   :  { %v2614_v48 = vpop.eup %2613 }
 0x592   :  { %v2616_v5 = vpop.eup %2615  ;;  %v1756_v7 = vmul.f32 1.442695, %v3278_v54  ;;  %v1750_v56 = vmul.f32 1.442695, %v3281_v53  ;;  %1812 = vadd.xlane.f32.xlu1 %v2614_v48 }
 0x593   :  { %1806 = vadd.xlane.f32.xlu0 %v2616_v5  ;;  %v1657_v9 = vpop.xlane.xlu1 %1656 }
 0x594   :  { %2621 = vpow2.f32 %v1756_v7  ;;  %v3286_v10 = vsub.f32 %v3158_v62, %v1657_v9 }
 0x595   :  { %v2618_v15 = vpop.eup %2617  ;;  %2623 = vpow2.f32 %v1750_v56 }
 0x596   :  { %v1752_v60 = vmul.f32 1.442695, %v3286_v10  ;;  %1808 = vadd.xlane.f32.xlu1 %v2618_v15 }
 0x598   :  { %2625 = vpow2.f32 %v1752_v60 }
 0x59b   :  { %v1667_v59 = vpop.xlane.xlu0 %1666 }
 0x59c   :  { %v3290_v16 = vsub.f32 %v3162_v0, %v1667_v59 }
 0x59d   :  { %v2620_v18 = vpop.eup %2619 }
 0x59e   :  { %v1762_v37 = vmul.f32 1.442695, %v3290_v16  ;;  %1818 = vadd.xlane.f32.xlu0 %v2620_v18 }
 0x59f   :  { %v1669_v19 = vpop.xlane.xlu1 %1668  ;;  %v1663_v43 = vpop.xlane.xlu0 %1662 }
 0x5a0   :  { %2627 = vpow2.f32 %v1762_v37  ;;  %v3294_v62 = vsub.f32 %v3169_v4, %v1669_v19  ;;  %v3297_v23 = vsub.f32 %v3166_v3, %v1663_v43 }
 0x5a1   :  { %v2622_v40 = vpop.eup %2621 }
 0x5a2   :  { %v2624_v47 = vpop.eup %2623  ;;  %v1764_v33 = vmul.f32 1.442695, %v3294_v62  ;;  %v1758_v0 = vmul.f32 1.442695, %v3297_v23  ;;  %1820 = vadd.xlane.f32.xlu1 %v2622_v40 }
 0x5a3   :  { %1814 = vadd.xlane.f32.xlu0 %v2624_v47  ;;  %v1665_v25 = vpop.xlane.xlu1 %1664 }
 0x5a4   :  { %2629 = vpow2.f32 %v1764_v33  ;;  %v3302_v20 = vsub.f32 %v3174_v6, %v1665_v25 }
 0x5a5   :  { %v2626_v35 = vpop.eup %2625  ;;  %2631 = vpow2.f32 %v1758_v0 }
 0x5a6   :  { %v1760_v4 = vmul.f32 1.442695, %v3302_v20  ;;  %1816 = vadd.xlane.f32.xlu1 %v2626_v35 }
 0x5a8   :  { %2633 = vpow2.f32 %v1760_v4 }
 0x5ab   :  { %v1675_v3 = vpop.xlane.xlu0 %1674 }
 0x5ac   :  { %v3306_v26 = vsub.f32 %v3178_v8, %v1675_v3 }
 0x5ad   :  { %v2628_v29 = vpop.eup %2627 }
 0x5ae   :  { %v1770_v28 = vmul.f32 1.442695, %v3306_v26  ;;  %1826 = vadd.xlane.f32.xlu0 %v2628_v29 }
 0x5af   :  { %v1677_v41 = vpop.xlane.xlu1 %1676  ;;  %v1671_v52 = vpop.xlane.xlu0 %1670 }
 0x5b0   :  { %2635 = vpow2.f32 %v1770_v28  ;;  %v3310_v6 = vsub.f32 %v3185_v12, %v1677_v41  ;;  %v3313_v51 = vsub.f32 %v3182_v11, %v1671_v52 }
 0x5b1   :  { %v2630_v50 = vpop.eup %2629 }
 0x5b2   :  { %v2632_v58 = vpop.eup %2631  ;;  %v1772_v42 = vmul.f32 1.442695, %v3310_v6  ;;  %v1766_v8 = vmul.f32 1.442695, %v3313_v51  ;;  %1828 = vadd.xlane.f32.xlu1 %v2630_v50 }
 0x5b3   :  { %1822 = vadd.xlane.f32.xlu0 %v2632_v58  ;;  %v1673_v61 = vpop.xlane.xlu1 %1672 }
 0x5b4   :  { %2637 = vpow2.f32 %v1772_v42  ;;  %v3318_v1 = vsub.f32 %v3190_v14, %v1673_v61 }
 0x5b5   :  { %v2634_v48 = vpop.eup %2633  ;;  %2639 = vpow2.f32 %v1766_v8 }
 0x5b6   :  { %v1768_v12 = vmul.f32 1.442695, %v3318_v1  ;;  %1824 = vadd.xlane.f32.xlu1 %v2634_v48 }
 0x5b8   :  { %2641 = vpow2.f32 %v1768_v12 }
 0x5bd   :  { %v2636_v11 = vpop.eup %2635  ;;  %v1679_v5 = vpop.xlane.xlu0 %1678 }
 0x5be   :  { %v3322_v7 = vsub.f32 %v3194_v17, %v1679_v5  ;;  %1834 = vadd.xlane.f32.xlu0 %v2636_v11 }
 0x5c0   :  { %v1774_v56 = vmul.f32 1.442695, %v3322_v7 }
 0x5c1   :  { %v2638_v9 = vpop.eup %2637  ;;  %v1681_v15 = vpop.xlane.xlu1 %1680 }
 0x5c2   :  { %v1683_v60 = vpop.xlane.xlu0 %1682  ;;  %v2640_v59 = vpop.eup %2639  ;;  %2643 = vpow2.f32 %v1774_v56  ;;  %v3326_v14 = vsub.f32 %v3201_v22, %v1681_v15  ;;  %1836 = vadd.xlane.f32.xlu1 %v2638_v9 }
 0x5c3   :  { %v3329_v18 = vsub.f32 %v3198_v21, %v1683_v60  ;;  %1830 = vadd.xlane.f32.xlu0 %v2640_v59 }
 0x5c4   :  { %v1776_v37 = vmul.f32 1.442695, %v3326_v14 }
 0x5c5   :  { %v1778_v17 = vmul.f32 1.442695, %v3329_v18  ;;  %v2642_v19 = vpop.eup %2641  ;;  %v1685_v43 = vpop.xlane.xlu1 %1684 }
 0x5c6   :  { %2645 = vpow2.f32 %v1776_v37  ;;  %v3334_v40 = vsub.f32 %v3206_v30, %v1685_v43  ;;  %1832 = vadd.xlane.f32.xlu1 %v2642_v19 }
 0x5c7   :  { %2647 = vpow2.f32 %v1778_v17 }
 0x5c8   :  { %v1780_v22 = vmul.f32 1.442695, %v3334_v40 }
 0x5ca   :  { %2649 = vpow2.f32 %v1780_v22 }
 0x5cf   :  { %v2644_v47 = vpop.eup %2643 }
 0x5d0   :  { %1838 = vadd.xlane.f32.xlu0 %v2644_v47 }
 0x5d3   :  { %v2646_v21 = vpop.eup %2645 }
 0x5d4   :  { %v2648_v33 = vpop.eup %2647  ;;  %1840 = vadd.xlane.f32.xlu1 %v2646_v21 }
 0x5d5   :  { %1842 = vadd.xlane.f32.xlu0 %v2648_v33 }
 0x5d7   :  { %v2650_v0 = vpop.eup %2649 }
 0x5d8   :  { %1844 = vadd.xlane.f32.xlu1 %v2650_v0 }
 0x5e7   :  { %v1787_v25 = vpop.xlane.xlu0 %1786 }
 0x5e8   :  { %2651 = vlog2.f32 %v1787_v25 }
 0x5eb   :  { %v1789_v35 = vpop.xlane.xlu1 %1788  ;;  %v1783_v4 = vpop.xlane.xlu0 %1782 }
 0x5ec   :  { %2653 = vlog2.f32 %v1789_v35 }
 0x5ed   :  { %2655 = vlog2.f32 %v1783_v4 }
 0x5ef   :  { %v1785_v30 = vpop.xlane.xlu1 %1784 }
 0x5f0   :  { %2657 = vlog2.f32 %v1785_v30 }
 0x5f5   :  { %v2652_v3 = vpop.eup %2651 }
 0x5f6   :  { %v1851_v29 = vmul.f32 0.6931472, %v2652_v3 }
 0x5f7   :  { %v1795_v28 = vpop.xlane.xlu0 %1794 }
 0x5f8   :  { %v1912_v41 = vsub.f32 %v3210_v36, %v1851_v29  ;;  %2659 = vlog2.f32 %v1795_v28 }
 0x5f9   :  { %v2654_v52 = vpop.eup %2653 }
 0x5fa   :  { %v2656_v50 = vpop.eup %2655  ;;  %1944 = vst [vmem:[%s3468_s3 + $0x10] sm:$0xff] %v1912_v41  ;;  %v1853_v58 = vmul.f32 0.6931472, %v2654_v52 }
 0x5fb   :  { %v1847_v42 = vmul.f32 0.6931472, %v2656_v50  ;;  %v1797_v8 = vpop.xlane.xlu1 %1796 }
 0x5fc   :  { %v1913_v61 = vsub.f32 %v3218_v38, %v1853_v58  ;;  %2661 = vlog2.f32 %v1797_v8  ;;  %v1791_v48 = vpop.xlane.xlu0 %1790 }
 0x5fd   :  { %v2658_v12 = vpop.eup %2657  ;;  %v1910_v11 = vsub.f32 %v3214_v46, %v1847_v42  ;;  %2663 = vlog2.f32 %v1791_v48 }
 0x5fe   :  { %1945 = vst [vmem:[%s3468_s3 + $0x18] sm:$0xff] %v1913_v61  ;;  %v1849_v36 = vmul.f32 0.6931472, %v2658_v12 }
 0x5ff   :  { %1942 = vst [vmem:[%s3468_s3] sm:$0xff] %v1910_v11  ;;  %v1793_v5 = vpop.xlane.xlu1 %1792 }
 0x600   :  { %v1911_v56 = vsub.f32 %v3222_v39, %v1849_v36  ;;  %2665 = vlog2.f32 %v1793_v5 }
 0x602   :  { %1943 = vst [vmem:[%s3468_s3 + $0x8] sm:$0xff] %v1911_v56 }
 0x605   :  { %v2660_v38 = vpop.eup %2659 }
 0x606   :  { %v1859_v46 = vmul.f32 0.6931472, %v2660_v38 }
 0x607   :  { %v1803_v9 = vpop.xlane.xlu0 %1802 }
 0x608   :  { %v1916_v15 = vsub.f32 %v3226_v24, %v1859_v46  ;;  %2667 = vlog2.f32 %v1803_v9 }
 0x609   :  { %v2662_v60 = vpop.eup %2661 }
 0x60a   :  { %v2664_v59 = vpop.eup %2663  ;;  %1948 = vst [vmem:[%s3468_s3 + $0x30] sm:$0xff] %v1916_v15  ;;  %v1861_v37 = vmul.f32 0.6931472, %v2662_v60 }
 0x60b   :  { %v1855_v17 = vmul.f32 0.6931472, %v2664_v59  ;;  %v1805_v39 = vpop.xlane.xlu1 %1804 }
 0x60c   :  { %v1917_v19 = vsub.f32 %v3230_v45, %v1861_v37  ;;  %2669 = vlog2.f32 %v1805_v39  ;;  %v1799_v43 = vpop.xlane.xlu0 %1798 }
 0x60d   :  { %v2666_v22 = vpop.eup %2665  ;;  %v1914_v47 = vsub.f32 %v3233_v55, %v1855_v17  ;;  %2671 = vlog2.f32 %v1799_v43 }
 0x60e   :  { %1949 = vst [vmem:[%s3468_s3 + $0x38] sm:$0xff] %v1917_v19  ;;  %v1857_v24 = vmul.f32 0.6931472, %v2666_v22 }
 0x60f   :  { %1946 = vst [vmem:[%s3468_s3 + $0x20] sm:$0xff] %v1914_v47  ;;  %v1801_v21 = vpop.xlane.xlu1 %1800 }
 0x610   :  { %v1915_v33 = vsub.f32 %v3238_v63, %v1857_v24  ;;  %2673 = vlog2.f32 %v1801_v21 }
 0x612   :  { %1947 = vst [vmem:[%s3468_s3 + $0x28] sm:$0xff] %v1915_v33 }
 0x615   :  { %v2668_v45 = vpop.eup %2667 }
 0x616   :  { %v1867_v55 = vmul.f32 0.6931472, %v2668_v45 }
 0x617   :  { %v1811_v0 = vpop.xlane.xlu0 %1810 }
 0x618   :  { %v1920_v25 = vsub.f32 %v3242_v2, %v1867_v55  ;;  %2675 = vlog2.f32 %v1811_v0 }
 0x619   :  { %v2670_v35 = vpop.eup %2669 }
 0x61a   :  { %v2672_v4 = vpop.eup %2671  ;;  %1952 = vst [vmem:[%s3468_s3 + $0x50] sm:$0xff] %v1920_v25  ;;  %v1869_v30 = vmul.f32 0.6931472, %v2670_v35 }
 0x61b   :  { %v1863_v3 = vmul.f32 0.6931472, %v2672_v4  ;;  %v1813_v63 = vpop.xlane.xlu1 %1812 }
 0x61c   :  { %v1921_v29 = vsub.f32 %v3246_v34, %v1869_v30  ;;  %2677 = vlog2.f32 %v1813_v63  ;;  %v1807_v28 = vpop.xlane.xlu0 %1806 }
 0x61d   :  { %v2674_v41 = vpop.eup %2673  ;;  %v1918_v52 = vsub.f32 %v3249_v13, %v1863_v3  ;;  %2679 = vlog2.f32 %v1807_v28 }
 0x61e   :  { %1953 = vst [vmem:[%s3468_s3 + $0x58] sm:$0xff] %v1921_v29  ;;  %v1865_v2 = vmul.f32 0.6931472, %v2674_v41 }
 0x61f   :  { %1950 = vst [vmem:[%s3468_s3 + $0x40] sm:$0xff] %v1918_v52  ;;  %v1809_v50 = vpop.xlane.xlu1 %1808 }
 0x620   :  { %v1919_v58 = vsub.f32 %v3254_v32, %v1865_v2  ;;  %2681 = vlog2.f32 %v1809_v50 }
 0x622   :  { %1951 = vst [vmem:[%s3468_s3 + $0x48] sm:$0xff] %v1919_v58 }
 0x625   :  { %v2676_v34 = vpop.eup %2675 }
 0x626   :  { %v1875_v13 = vmul.f32 0.6931472, %v2676_v34 }
 0x627   :  { %v1819_v42 = vpop.xlane.xlu0 %1818 }
 0x628   :  { %v1924_v8 = vsub.f32 %v3258_v44, %v1875_v13  ;;  %2683 = vlog2.f32 %v1819_v42 }
 0x629   :  { %v2678_v61 = vpop.eup %2677 }
 0x62a   :  { %v2680_v48 = vpop.eup %2679  ;;  %1956 = vst [vmem:[%s3468_s3 + $0x70] sm:$0xff] %v1924_v8  ;;  %v1877_v12 = vmul.f32 0.6931472, %v2678_v61 }
 0x62b   :  { %v1871_v11 = vmul.f32 0.6931472, %v2680_v48  ;;  %v1821_v32 = vpop.xlane.xlu1 %1820 }
 0x62c   :  { %v1925_v36 = vsub.f32 %v3262_v27, %v1877_v12  ;;  %2685 = vlog2.f32 %v1821_v32  ;;  %v1815_v5 = vpop.xlane.xlu0 %1814 }
 0x62d   :  { %v2682_v56 = vpop.eup %2681  ;;  %v1922_v38 = vsub.f32 %v3265_v31, %v1871_v11  ;;  %2687 = vlog2.f32 %v1815_v5 }
 0x62e   :  { %1957 = vst [vmem:[%s3468_s3 + $0x78] sm:$0xff] %v1925_v36  ;;  %v1873_v44 = vmul.f32 0.6931472, %v2682_v56 }
 0x62f   :  { %1954 = vst [vmem:[%s3468_s3 + $0x60] sm:$0xff] %v1922_v38  ;;  %v1817_v46 = vpop.xlane.xlu1 %1816 }
 0x630   :  { %v1923_v9 = vsub.f32 %v3270_v49, %v1873_v44  ;;  %2689 = vlog2.f32 %v1817_v46 }
 0x632   :  { %1955 = vst [vmem:[%s3468_s3 + $0x68] sm:$0xff] %v1923_v9 }
 0x635   :  { %v2684_v27 = vpop.eup %2683 }
 0x636   :  { %v1883_v31 = vmul.f32 0.6931472, %v2684_v27 }
 0x637   :  { %v1827_v15 = vpop.xlane.xlu0 %1826 }
 0x638   :  { %v1928_v60 = vsub.f32 %v3274_v57, %v1883_v31  ;;  %2691 = vlog2.f32 %v1827_v15 }
 0x639   :  { %v2686_v59 = vpop.eup %2685 }
 0x63a   :  { %v2688_v37 = vpop.eup %2687  ;;  %1960 = vst [vmem:[%s3468_s3 + $0x90] sm:$0xff] %v1928_v60  ;;  %v1885_v17 = vmul.f32 0.6931472, %v2686_v59 }
 0x63b   :  { %v1879_v39 = vmul.f32 0.6931472, %v2688_v37  ;;  %v1829_v49 = vpop.xlane.xlu1 %1828 }
 0x63c   :  { %v1929_v19 = vsub.f32 %v3278_v54, %v1885_v17  ;;  %2693 = vlog2.f32 %v1829_v49  ;;  %v1823_v43 = vpop.xlane.xlu0 %1822 }
 0x63d   :  { %v2690_v22 = vpop.eup %2689  ;;  %v1926_v47 = vsub.f32 %v3281_v53, %v1879_v39  ;;  %2695 = vlog2.f32 %v1823_v43 }
 0x63e   :  { %1961 = vst [vmem:[%s3468_s3 + $0x98] sm:$0xff] %v1929_v19  ;;  %v1881_v57 = vmul.f32 0.6931472, %v2690_v22 }
 0x63f   :  { %1958 = vst [vmem:[%s3468_s3 + $0x80] sm:$0xff] %v1926_v47  ;;  %v1825_v24 = vpop.xlane.xlu1 %1824 }
 0x640   :  { %v1927_v21 = vsub.f32 %v3286_v10, %v1881_v57  ;;  %2697 = vlog2.f32 %v1825_v24 }
 0x642   :  { %1959 = vst [vmem:[%s3468_s3 + $0x88] sm:$0xff] %v1927_v21 }
 0x645   :  { %v2692_v54 = vpop.eup %2691 }
 0x646   :  { %v1891_v53 = vmul.f32 0.6931472, %v2692_v54 }
 0x647   :  { %v1835_v33 = vpop.xlane.xlu0 %1834 }
 0x648   :  { %v1932_v45 = vsub.f32 %v3290_v16, %v1891_v53  ;;  %2699 = vlog2.f32 %v1835_v33 }
 0x649   :  { %v2694_v55 = vpop.eup %2693 }
 0x64a   :  { %v2696_v0 = vpop.eup %2695  ;;  %1964 = vst [vmem:[%s3468_s3 + $0xb0] sm:$0xff] %v1932_v45  ;;  %v1893_v25 = vmul.f32 0.6931472, %v2694_v55 }
 0x64b   :  { %v1887_v35 = vmul.f32 0.6931472, %v2696_v0  ;;  %v1837_v10 = vpop.xlane.xlu1 %1836 }
 0x64c   :  { %v1933_v4 = vsub.f32 %v3294_v62, %v1893_v25  ;;  %2701 = vlog2.f32 %v1837_v10  ;;  %v1831_v30 = vpop.xlane.xlu0 %1830 }
 0x64d   :  { %v2698_v3 = vpop.eup %2697  ;;  %v1930_v63 = vsub.f32 %v3297_v23, %v1887_v35  ;;  %2703 = vlog2.f32 %v1831_v30 }
 0x64e   :  { %1965 = vst [vmem:[%s3468_s3 + $0xb8] sm:$0xff] %v1933_v4  ;;  %v1889_v16 = vmul.f32 0.6931472, %v2698_v3 }
 0x64f   :  { %1962 = vst [vmem:[%s3468_s3 + $0xa0] sm:$0xff] %v1930_v63  ;;  %v1833_v29 = vpop.xlane.xlu1 %1832 }
 0x650   :  { %v1931_v28 = vsub.f32 %v3302_v20, %v1889_v16  ;;  %2705 = vlog2.f32 %v1833_v29 }
 0x652   :  { %1963 = vst [vmem:[%s3468_s3 + $0xa8] sm:$0xff] %v1931_v28 }
 0x655   :  { %v2700_v62 = vpop.eup %2699 }
 0x656   :  { %v1899_v23 = vmul.f32 0.6931472, %v2700_v62 }
 0x658   :  { %v1936_v41 = vsub.f32 %v3306_v26, %v1899_v23 }
 0x659   :  { %v2702_v52 = vpop.eup %2701  ;;  %v1839_v2 = vpop.xlane.xlu0 %1838 }
 0x65a   :  { %v2704_v50 = vpop.eup %2703  ;;  %1968 = vst [vmem:[%s3468_s3 + $0xd0] sm:$0xff] %v1936_v41  ;;  %v1901_v58 = vmul.f32 0.6931472, %v2702_v52  ;;  %2707 = vlog2.f32 %v1839_v2 }
 0x65b   :  { %v1895_v34 = vmul.f32 0.6931472, %v2704_v50 }
 0x65c   :  { %v1937_v20 = vsub.f32 %v3310_v6, %v1901_v58 }
 0x65d   :  { %v2706_v13 = vpop.eup %2705  ;;  %v1934_v42 = vsub.f32 %v3313_v51, %v1895_v34  ;;  %v1841_v8 = vpop.xlane.xlu1 %1840 }
 0x65e   :  { %1969 = vst [vmem:[%s3468_s3 + $0xd8] sm:$0xff] %v1937_v20  ;;  %v1897_v26 = vmul.f32 0.6931472, %v2706_v13  ;;  %2709 = vlog2.f32 %v1841_v8  ;;  %v1843_v61 = vpop.xlane.xlu0 %1842 }
 0x65f   :  { %1966 = vst [vmem:[%s3468_s3 + $0xc0] sm:$0xff] %v1934_v42  ;;  %2711 = vlog2.f32 %v1843_v61 }
 0x660   :  { %v1935_v48 = vsub.f32 %v3318_v1, %v1897_v26 }
 0x661   :  { %v1845_v12 = vpop.xlane.xlu1 %1844 }
 0x662   :  { %1967 = vst [vmem:[%s3468_s3 + $0xc8] sm:$0xff] %v1935_v48  ;;  %2713 = vlog2.f32 %v1845_v12 }
 0x667   :  { %v2708_v6 = vpop.eup %2707 }
 0x668   :  { %v1903_v51 = vmul.f32 0.6931472, %v2708_v6 }
 0x66a   :  { %v1938_v11 = vsub.f32 %v3322_v7, %v1903_v51 }
 0x66b   :  { %v2710_v32 = vpop.eup %2709 }
 0x66c   :  { %v2712_v36 = vpop.eup %2711  ;;  %1970 = vst [vmem:[%s3468_s3 + $0xe0] sm:$0xff] %v1938_v11  ;;  %v1905_v5 = vmul.f32 0.6931472, %v2710_v32 }
 0x66d   :  { %v1907_v56 = vmul.f32 0.6931472, %v2712_v36 }
 0x66e   :  { %v1939_v1 = vsub.f32 %v3326_v14, %v1905_v5 }
 0x66f   :  { %v2714_v38 = vpop.eup %2713  ;;  %v1940_v44 = vsub.f32 %v3329_v18, %v1907_v56 }
 0x670   :  { %1971 = vst [vmem:[%s3468_s3 + $0xe8] sm:$0xff] %v1939_v1  ;;  %v1909_v46 = vmul.f32 0.6931472, %v2714_v38 }
 0x671   :  { %1972 = vst [vmem:[%s3468_s3 + $0xf0] sm:$0xff] %v1940_v44 }
 0x672   :  { %v1941_v7 = vsub.f32 %v3334_v40, %v1909_v46 }
 0x674   :  { %1973 = vst [vmem:[%s3468_s3 + $0xf8] sm:$0xff] %v1941_v7 }
 0x675   :  { %1978 = vsyncpa [#allocation3], 1 }

</bundles_post_ra>
